<compile_context>
chip_gen: v7x
topology: tpu7x:2x2x1
jax: 0.10.0
libtpu: 0.0.40
codegen_flags: <defaults>
</compile_context>

<pallas_src>
import functools
import math

import jax
import jax.numpy as jnp
from jax import lax
from jax.experimental import pallas as pl
from jax.experimental.pallas import tpu as pltpu


_VMEM_LIMIT_BYTES = 64 * 1024 * 1024   # safe on v5e/v6e (128 MiB) and v7x (64 MiB)


def _layernorm(x, gamma, beta, eps=1e-5):
    # PyTorch LayerNorm: biased variance over the last dim, stats in f32.
    mu = jnp.mean(x, axis=-1, keepdims=True)
    xc = x - mu
    var = jnp.mean(xc * xc, axis=-1, keepdims=True)
    return xc * lax.rsqrt(var + eps) * gamma + beta


def _largest_divisor_leq(n, target):
    d = min(n, max(1, target))
    while n % d != 0:
        d -= 1
    return d


# ---------------------------------------------------------------------------
# Stage 1: igates = LN_i(x @ Wih^T), row-tiled, bf16 output, "parallel" grid.
# ---------------------------------------------------------------------------
def _igates_kernel(x_ref, wih_t_ref, gi_ref, bi_ref, out_ref):
    # Cast x to the matmul dtype in-kernel (hidden under the MXU, no extra
    # HBM pass in the wrapper).
    x = x_ref[...].astype(wih_t_ref.dtype)
    ig = jnp.dot(x, wih_t_ref[...], preferred_element_type=jnp.float32)
    out_ref[...] = _layernorm(ig, gi_ref[...], bi_ref[...]).astype(out_ref.dtype)


# ---------------------------------------------------------------------------
# Stage 2: fused recurrence, Tc timesteps per grid step; Whh^T / LN params /
# h0 / c0 VMEM-resident via constant index_maps, h/c carried in VMEM scratch.
# ---------------------------------------------------------------------------
def _recurrent_kernel(igates_ref, whh_t_ref, gh_ref, bh_ref, gc_ref, bc_ref,
                      h0_ref, c0_ref,
                      hy_ref, cy_ref,
                      h_mm_scr, c_scr, *, hidden_size, batch, steps_per_block):
    H = hidden_size
    B = batch
    Tc = steps_per_block
    tb = pl.program_id(0)

    @pl.when(tb == 0)
    def _():
        h_mm_scr[...] = h0_ref[...].astype(h_mm_scr.dtype)   # bf16 matmul operand
        c_scr[...] = c0_ref[...].astype(jnp.float32)         # f32 cell state

    gh = gh_ref[...]
    bh = bh_ref[...]
    gc = gc_ref[...]
    bc = bc_ref[...]

    def step(i, carry):
        row0 = pl.multiple_of(i * B, B)
        c = c_scr[...]

        # (B, 4H) = (B, H) @ (H, 4H) -- MXU, bf16 operands, f32 accumulation.
        hgates = jnp.dot(h_mm_scr[...], whh_t_ref[...],
                         preferred_element_type=jnp.float32)
        hgates = _layernorm(hgates, gh, bh)

        # igates are precomputed & LayerNormed (bf16 in HBM); add in f32.
        gates = igates_ref[pl.ds(row0, B), :].astype(jnp.float32) + hgates

        # Gate order in memory is (i, f, o, g): one contiguous sigmoid slab.
        sig = jax.nn.sigmoid(gates[:, 0:3 * H])
        ingate     = sig[:, 0 * H:1 * H]
        forgetgate = sig[:, 1 * H:2 * H]
        outgate    = sig[:, 2 * H:3 * H]
        cellgate   = jnp.tanh(gates[:, 3 * H:4 * H])

        cy = _layernorm(forgetgate * c + ingate * cellgate, gc, bc)
        hy = outgate * jnp.tanh(cy)

        c_scr[...] = cy
        h_mm_scr[...] = hy.astype(h_mm_scr.dtype)
        hy_ref[pl.ds(row0, B), :] = hy.astype(hy_ref.dtype)
        cy_ref[pl.ds(row0, B), :] = cy.astype(cy_ref.dtype)
        return carry

    lax.fori_loop(0, Tc, step, 0, unroll=True)


# ---------------------------------------------------------------------------
# Fused single-step kernel (inference/decode path): igates + recurrence in
# one pallas_call, no grid.
# ---------------------------------------------------------------------------
def _single_step_kernel(x_ref, wih_t_ref, whh_t_ref, gi_ref, bi_ref,
                        gh_ref, bh_ref, gc_ref, bc_ref, h0_ref, c0_ref,
                        hy_ref, cy_ref, *, hidden_size):
    H = hidden_size
    x = x_ref[...].astype(wih_t_ref.dtype)
    igates = _layernorm(
        jnp.dot(x, wih_t_ref[...], preferred_element_type=jnp.float32),
        gi_ref[...], bi_ref[...])
    h = h0_ref[...].astype(whh_t_ref.dtype)
    hgates = _layernorm(
        jnp.dot(h, whh_t_ref[...], preferred_element_type=jnp.float32),
        gh_ref[...], bh_ref[...])
    gates = igates + hgates
    c = c0_ref[...].astype(jnp.float32)

    sig = jax.nn.sigmoid(gates[:, 0:3 * H])
    ingate     = sig[:, 0 * H:1 * H]
    forgetgate = sig[:, 1 * H:2 * H]
    outgate    = sig[:, 2 * H:3 * H]
    cellgate   = jnp.tanh(gates[:, 3 * H:4 * H])

    cy = _layernorm(forgetgate * c + ingate * cellgate, gc_ref[...], bc_ref[...])
    hy = outgate * jnp.tanh(cy)
    hy_ref[...] = hy.astype(hy_ref.dtype)
    cy_ref[...] = cy.astype(cy_ref.dtype)


# ---------------------------------------------------------------------------
# Parameter preparation (one-time): transpose, gate-permute, cast, reshape.
# ---------------------------------------------------------------------------
def prepare_params(params, hidden_size, matmul_dtype=jnp.bfloat16):
    H = hidden_size
    # (i, f, g, o) -> (i, f, o, g); LayerNorm over 4H commutes with the
    # permutation as long as gamma/beta are permuted the same way.
    perm = jnp.concatenate([
        jnp.arange(0, 2 * H),          # i, f
        jnp.arange(3 * H, 4 * H),      # o
        jnp.arange(2 * H, 3 * H),      # g
    ])
    f32 = jnp.float32
    return {
        "wih_t": params["weight_ih"][perm, :].T.astype(matmul_dtype),  # (I, 4H)
        "whh_t": params["weight_hh"][perm, :].T.astype(matmul_dtype),  # (H, 4H)
        "gi": params["ln_i_weight"][perm].reshape(1, 4 * H).astype(f32),
        "bi": params["ln_i_bias"][perm].reshape(1, 4 * H).astype(f32),
        "gh": params["ln_h_weight"][perm].reshape(1, 4 * H).astype(f32),
        "bh": params["ln_h_bias"][perm].reshape(1, 4 * H).astype(f32),
        "gc": params["ln_c_weight"].reshape(1, H).astype(f32),
        "bc": params["ln_c_bias"].reshape(1, H).astype(f32),
    }


# ---------------------------------------------------------------------------
# Wrappers
# ---------------------------------------------------------------------------
def layernorm_lstm_sequence(x_seq, h0, c0, prep, hidden_size,
                            time_chunk=8, stage1_target_rows=512):
    """Run T LayerNormLSTMCell steps fused. Returns (hy_seq, cy_seq), (T,B,H)."""
    T, B, I = x_seq.shape
    H = hidden_size
    assert H % 128 == 0, "H must be a multiple of 128 (lane-aligned gates)"
    assert B % 8 == 0, "B must be a multiple of 8 (sublane-aligned blocks)"

    x_flat = x_seq.reshape(T * B, I)   # metadata-only reshape, no cast here

    # ---- Stage 1: LN'd input gates for the whole sequence, row-tiled. ----
    # Row tile = Ts1 timesteps worth of rows, Ts1 | T, rows <= target.
    Ts1 = _largest_divisor_leq(T, max(1, stage1_target_rows // B))
    R = Ts1 * B
    igates = pl.pallas_call(
        _igates_kernel,
        grid=(T // Ts1,),
        out_shape=jax.ShapeDtypeStruct((T * B, 4 * H), jnp.bfloat16),
        in_specs=[pl.BlockSpec((R, I), lambda i: (i, 0)),          # x rows (streamed)
                  pl.BlockSpec((I, 4 * H), lambda i: (0, 0)),      # Wih^T (resident)
                  pl.BlockSpec((1, 4 * H), lambda i: (0, 0)),      # LN_i gamma
                  pl.BlockSpec((1, 4 * H), lambda i: (0, 0))],     # LN_i beta
        out_specs=pl.BlockSpec((R, 4 * H), lambda i: (i, 0)),
        compiler_params=pltpu.CompilerParams(
            dimension_semantics=("parallel",),
            vmem_limit_bytes=_VMEM_LIMIT_BYTES),
    )(x_flat, prep["wih_t"], prep["gi"], prep["bi"])

    # ---- Stage 2: fused recurrence, Tc timesteps per grid step. ----
    Tc = _largest_divisor_leq(T, time_chunk)
    res = lambda shape: pl.BlockSpec(shape, lambda t: (0,) * len(shape))
    step = lambda shape: pl.BlockSpec(
        shape, lambda t: (t,) + (0,) * (len(shape) - 1))

    hy_flat, cy_flat = pl.pallas_call(
        functools.partial(_recurrent_kernel, hidden_size=H, batch=B,
                          steps_per_block=Tc),
        grid=(T // Tc,),
        out_shape=(jax.ShapeDtypeStruct((T * B, H), x_seq.dtype),
                   jax.ShapeDtypeStruct((T * B, H), x_seq.dtype)),
        in_specs=[step((Tc * B, 4 * H)),                   # igates chunk (streamed)
                  res((H, 4 * H)),                         # Whh^T (resident)
                  res((1, 4 * H)), res((1, 4 * H)),        # LN_h gamma/beta
                  res((1, H)), res((1, H)),                # LN_c gamma/beta
                  res((B, H)), res((B, H))],               # h0, c0
        out_specs=(step((Tc * B, H)), step((Tc * B, H))),
        scratch_shapes=[pltpu.VMEM((B, H), jnp.bfloat16),  # h (matmul operand)
                        pltpu.VMEM((B, H), jnp.float32)],  # c carry (f32)
        compiler_params=pltpu.CompilerParams(
            dimension_semantics=("arbitrary",),            # true recurrence
            vmem_limit_bytes=_VMEM_LIMIT_BYTES),
    )(igates, prep["whh_t"], prep["gh"], prep["bh"],
      prep["gc"], prep["bc"], h0, c0)

    return hy_flat.reshape(T, B, H), cy_flat.reshape(T, B, H)


def layernorm_lstm_cell(x, hx, cx, prep, hidden_size):
    """Single step (original module interface): one fused pallas_call."""
    B, I = x.shape
    H = hidden_size
    full = lambda shape: pl.BlockSpec(shape, lambda: (0,) * len(shape))
    hy, cy = pl.pallas_call(
        functools.partial(_single_step_kernel, hidden_size=H),
        out_shape=(jax.ShapeDtypeStruct((B, H), x.dtype),
                   jax.ShapeDtypeStruct((B, H), x.dtype)),
        in_specs=[full((B, I)), full((I, 4 * H)), full((H, 4 * H)),
                  full((1, 4 * H)), full((1, 4 * H)),
                  full((1, 4 * H)), full((1, 4 * H)),
                  full((1, H)), full((1, H)),
                  full((B, H)), full((B, H))],
        out_specs=(full((B, H)), full((B, H))),
        compiler_params=pltpu.CompilerParams(
            vmem_limit_bytes=_VMEM_LIMIT_BYTES),
    )(x, prep["wih_t"], prep["whh_t"], prep["gi"], prep["bi"],
      prep["gh"], prep["bh"], prep["gc"], prep["bc"], hx, cx)
    return hy, (hy, cy)


# ---------------------------------------------------------------------------
# Init + pure-JAX reference (PyTorch semantics, f32 everywhere)
# ---------------------------------------------------------------------------
def init_params(key, input_size, hidden_size, forget_gate_bias):
    H = hidden_size
    stdv = 1.0 / math.sqrt(H)
    ks = jax.random.split(key, 8)
    u = lambda k, shape: jax.random.uniform(k, shape, jnp.float32, -stdv, stdv)
    params = {
        "weight_ih": u(ks[0], (4 * H, input_size)),
        "weight_hh": u(ks[1], (4 * H, H)),
        "ln_i_weight": u(ks[2], (4 * H,)),
        "ln_i_bias": u(ks[3], (4 * H,)),
        "ln_h_weight": u(ks[4], (4 * H,)),
        "ln_h_bias": u(ks[5], (4 * H,)),
        "ln_c_weight": u(ks[6], (H,)),
        "ln_c_bias": u(ks[7], (H,)),
    }
    # layernorm_i.bias[H:2H] = 0 ; layernorm_h.bias[H:2H] = forget_gate_bias
    params["ln_i_bias"] = params["ln_i_bias"].at[H:2 * H].set(0.0)
    params["ln_h_bias"] = params["ln_h_bias"].at[H:2 * H].set(forget_gate_bias)
    return params


def reference_sequence(x_seq, h0, c0, params, hidden_size):
    def one_step(carry, x):
        h, c = carry
        igates = _layernorm(x @ params["weight_ih"].T,
                            params["ln_i_weight"], params["ln_i_bias"])
        hgates = _layernorm(h @ params["weight_hh"].T,
                            params["ln_h_weight"], params["ln_h_bias"])
        gates = igates + hgates
        i, f, g, o = jnp.split(gates, 4, axis=1)
        i, f, g, o = (jax.nn.sigmoid(i), jax.nn.sigmoid(f),
                      jnp.tanh(g), jax.nn.sigmoid(o))
        cy = _layernorm(f * c + i * g,
                        params["ln_c_weight"], params["ln_c_bias"])
        hy = o * jnp.tanh(cy)
        return (hy, cy), (hy, cy)

    _, (hys, cys) = lax.scan(one_step, (h0, c0), x_seq)
    return hys, cys


if __name__ == "__main__":
    B, I, H, T = 8, 64, 128, 16       # H multiple of 128, B multiple of 8
    forget_gate_bias = 1.0

    key = jax.random.PRNGKey(0)
    kp, kx, kh, kc = jax.random.split(key, 4)
    params = init_params(kp, I, H, forget_gate_bias)
    x_seq = jax.random.normal(kx, (T, B, I), jnp.float32)
    hx = jax.random.normal(kh, (B, H), jnp.float32)
    cx = jax.random.normal(kc, (B, H), jnp.float32)

    prep = prepare_params(params, H, matmul_dtype=jnp.bfloat16)

    # Fused-sequence kernel (stage 1 row-tiled, stage 2 time-chunked, Tc=8).
    hy_seq, cy_seq = layernorm_lstm_sequence(x_seq, hx, cx, prep, H,
                                             time_chunk=8)
    jax.block_until_ready((hy_seq, cy_seq))

    # f32 reference; bf16 MXU operands & bf16 igates intermediate => relaxed tol.
    hy_ref, cy_ref = reference_sequence(x_seq, hx, cx, params, H)
    err_h = float(jnp.max(jnp.abs(hy_seq - hy_ref)))
    err_c = float(jnp.max(jnp.abs(cy_seq - cy_ref)))
    assert jnp.allclose(hy_seq, hy_ref, atol=3e-2, rtol=3e-2), f"hy mismatch {err_h}"
    assert jnp.allclose(cy_seq, cy_ref, atol=3e-2, rtol=3e-2), f"cy mismatch {err_c}"

    # Single-step (original module interface): one fused pallas_call.
    hy1, (hy1b, cy1) = layernorm_lstm_cell(x_seq[0], hx, cx, prep, H)
    jax.block_until_ready((hy1, cy1))
    assert jnp.allclose(hy1, hy_ref[0], atol=3e-2, rtol=3e-2), "single-step hy mismatch"
    assert jnp.allclose(cy1, cy_ref[0], atol=3e-2, rtol=3e-2), "single-step cy mismatch"

    print("KERNEL_OK")
</pallas_src>

<mosaic_0001>
module attributes {stable_mosaic.version = 11 : i64} {
  func.func @_igates_kernel(%arg0: i32, %arg1: memref<128x64xf32, #tpu.memory_space<vmem>>, %arg2: memref<64x512xbf16, #tpu.memory_space<vmem>>, %arg3: memref<1x512xf32, #tpu.memory_space<vmem>>, %arg4: memref<1x512xf32, #tpu.memory_space<vmem>>, %arg5: memref<128x512xbf16, #tpu.memory_space<vmem>>) attributes {dimension_semantics = [#tpu.dimension_semantics<parallel>], iteration_bounds = array<i64: 1>, scalar_prefetch = 0 : i64, scratch_operands = 0 : i64, tpu.core_type = #tpu.core_type<tc>, window_params = [{transform_indices = @transform_0, window_bounds = array<i64: 128, 64>}, {pipeline_mode = #tpu.pipeline_mode<synchronous>, transform_indices = @transform_1, window_bounds = array<i64: 64, 512>}, {pipeline_mode = #tpu.pipeline_mode<synchronous>, transform_indices = @transform_2, window_bounds = array<i64: 1, 512>}, {pipeline_mode = #tpu.pipeline_mode<synchronous>, transform_indices = @transform_3, window_bounds = array<i64: 1, 512>}, {transform_indices = @transform_4, window_bounds = array<i64: 128, 512>}]} {
    %c0 = arith.constant 0 : index
    %c0_0 = arith.constant 0 : index
    %0 = vector.load %arg1[%c0, %c0_0] : memref<128x64xf32, #tpu.memory_space<vmem>>, vector<128x64xf32>
    %1 = arith.truncf %0 : vector<128x64xf32> to vector<128x64xbf16>
    %c0_1 = arith.constant 0 : index
    %c0_2 = arith.constant 0 : index
    %2 = vector.load %arg2[%c0_1, %c0_2] : memref<64x512xbf16, #tpu.memory_space<vmem>>, vector<64x512xbf16>
    %cst = arith.constant dense<0.000000e+00> : vector<128x512xf32>
    %3 = tpu.matmul %1, %2, %cst {dimension_numbers = #tpu.dot_dimension_numbers<[1], [0], [0], [1], [0, 0, 1, 1], [], []>} : vector<128x64xbf16>, vector<64x512xbf16>, vector<128x512xf32> -> vector<128x512xf32>
    %c0_3 = arith.constant 0 : index
    %c0_4 = arith.constant 0 : index
    %4 = vector.load %arg3[%c0_3, %c0_4] : memref<1x512xf32, #tpu.memory_space<vmem>>, vector<1x512xf32>
    %c0_5 = arith.constant 0 : index
    %c0_6 = arith.constant 0 : index
    %5 = vector.load %arg4[%c0_5, %c0_6] : memref<1x512xf32, #tpu.memory_space<vmem>>, vector<1x512xf32>
    %cst_7 = arith.constant dense<0.000000e+00> : vector<128xf32>
    %6 = vector.multi_reduction <add>, %3, %cst_7 [1] : vector<128x512xf32> to vector<128xf32>
    %7 = vector.shape_cast %6 : vector<128xf32> to vector<128x1xf32>
    %cst_8 = arith.constant 5.120000e+02 : f32
    %8 = vector.broadcast %cst_8 : f32 to vector<128x1xf32>
    %9 = arith.divf %7, %8 : vector<128x1xf32>
    %10 = vector.broadcast %9 : vector<128x1xf32> to vector<128x512xf32>
    %11 = arith.subf %3, %10 : vector<128x512xf32>
    %12 = arith.mulf %11, %11 : vector<128x512xf32>
    %cst_9 = arith.constant dense<0.000000e+00> : vector<128xf32>
    %13 = vector.multi_reduction <add>, %12, %cst_9 [1] : vector<128x512xf32> to vector<128xf32>
    %14 = vector.shape_cast %13 : vector<128xf32> to vector<128x1xf32>
    %cst_10 = arith.constant 5.120000e+02 : f32
    %15 = vector.broadcast %cst_10 : f32 to vector<128x1xf32>
    %16 = arith.divf %14, %15 : vector<128x1xf32>
    %cst_11 = arith.constant 9.99999974E-6 : f32
    %17 = vector.broadcast %cst_11 : f32 to vector<128x1xf32>
    %18 = arith.addf %16, %17 : vector<128x1xf32>
    %19 = math.rsqrt %18 : vector<128x1xf32>
    %20 = vector.broadcast %19 : vector<128x1xf32> to vector<128x512xf32>
    %21 = arith.mulf %11, %20 : vector<128x512xf32>
    %22 = vector.broadcast %4 : vector<1x512xf32> to vector<128x512xf32>
    %23 = arith.mulf %21, %22 : vector<128x512xf32>
    %24 = vector.broadcast %5 : vector<1x512xf32> to vector<128x512xf32>
    %25 = arith.addf %23, %24 : vector<128x512xf32>
    %26 = arith.truncf %25 : vector<128x512xf32> to vector<128x512xbf16>
    %c0_12 = arith.constant 0 : index
    %c0_13 = arith.constant 0 : index
    %27 = vector.load %arg5[%c0_12, %c0_13] : memref<128x512xbf16, #tpu.memory_space<vmem>>, vector<128x512xbf16>
    tpu.vector_store %arg5[%c0_12, %c0_13], %26 {strides = array<i32>} : memref<128x512xbf16, #tpu.memory_space<vmem>>, vector<128x512xbf16>,
    return
  }
  func.func @transform_0(%arg0: i32) -> (i32, i32) {
    %c0_i32 = arith.constant 0 : i32
    %c0_i32_0 = arith.constant 0 : i32
    return %arg0, %c0_i32 : i32, i32
  }
  func.func @transform_1(%arg0: i32) -> (i32, i32) {
    %c0_i32 = arith.constant 0 : i32
    %c0_i32_0 = arith.constant 0 : i32
    %c0_i32_1 = arith.constant 0 : i32
    return %c0_i32, %c0_i32_0 : i32, i32
  }
  func.func @transform_2(%arg0: i32) -> (i32, i32) {
    %c0_i32 = arith.constant 0 : i32
    %c0_i32_0 = arith.constant 0 : i32
    %c0_i32_1 = arith.constant 0 : i32
    return %c0_i32, %c0_i32_0 : i32, i32
  }
  func.func @transform_3(%arg0: i32) -> (i32, i32) {
    %c0_i32 = arith.constant 0 : i32
    %c0_i32_0 = arith.constant 0 : i32
    %c0_i32_1 = arith.constant 0 : i32
    return %c0_i32, %c0_i32_0 : i32, i32
  }
  func.func @transform_4(%arg0: i32) -> (i32, i32) {
    %c0_i32 = arith.constant 0 : i32
    %c0_i32_0 = arith.constant 0 : i32
    return %arg0, %c0_i32 : i32, i32
  }
}

</mosaic_0001>

<bundles_post_ra>
// kernel: tpu_custom_call.1
= control target key start
LH: loop header
LB: loop body
LE: loop exit
PB: predicated region body
PF: predicated region fallthrough
CT: control target
= control target key end

     0   :  { %9 = vsyncpa [#allocation3], 0  ;;  %s2406_s0 = inlined_call_operand.hbm [shape: f32[128,64], index: 0, kind: input, shape index: {}]   ;;  %s2407_s1 = inlined_call_operand.hbm [shape: bf16[64,512], index: 1, kind: input, shape index: {}]   ;;  %s2408_s2 = inlined_call_operand.hbm [shape: f32[1,512], index: 2, kind: input, shape index: {}]   ;;  %s2409_s3 = inlined_call_operand.hbm [shape: f32[1,512], index: 3, kind: input, shape index: {}]   ;;  %s2410_s4 = inlined_call_operand.hbm [shape: bf16[128,512], index: 4, kind: output, shape index: {}]  }
   0x1   :  { %10 = vsyncpa [#allocation6], 0 }
   0x2   :  { %11 = vsyncpa [#allocation9], 0 }
   0x3   :  { %12 = vsyncpa [#allocation4], 0  ;;  %s1553_s15 = smov [#allocation5]   ;;  %s1435_s19 = scalar_lea.hbm %s2407_s1, 2048 }
   0x4   :  { %s30_s16 = sshll.u32 %s1553_s15, 4  ;;  %p1436_p0 = scmp.ne.s32.totalorder %s2407_s1, %s1435_s19  ;;  %s31_s16 = int_to_ptr.vmem [resolvable:$true] %s30_s16 }
   0x5   :  { %p1439_p1 = scmp.lt.u32.totalorder %s1435_s19, %s2407_s1 }
   0x7   :  { %p1441_p2 = pnand %p1439_p1, %p1436_p0 }
   0x9   :  { %1444 = shalt.err (!%p1441_p2)
}
   0xa   :  { %s1445_s24 = scalar_lea.vmem %s31_s16, 2048  ;;  %p1450_p4 = scmp.lt.s32.totalorder %s31_s16, %s31_s16 }
   0xb   :  { %p1446_p3 = scmp.ne.s32.totalorder %s31_s16, %s1445_s24  ;;  %p1451_p5 = scmp.lt.s32.totalorder %s1445_s24, %s1445_s24 }
   0xd   :  { %p1452_p6 = por %p1451_p5, %p1450_p4 }
   0xf   :  { %p1453_p7 = pnand %p1452_p6, %p1446_p3 }
  0x11   :  { %1456 = shalt.err (!%p1453_p7)
}
  0x12   :  { %s1554_s25 = smov 256   ;;  %s1555_s26 = smov 16  }
  0x13   :  { %36 = dma.hbm_to_vmem [thread:$0]  %s2407_s1, 2048, %s31_s16, [#allocation6], %s1554_s25, %s1554_s25, %s1555_s26  }
  0x14   :  { %s1556_s29 = smov [#allocation2]   ;;  %s1457_s7 = scalar_lea.hbm %s2406_s0, 2048 }
  0x15   :  { %s18_s30 = sshll.u32 %s1556_s29, 4  ;;  %p1458_p8 = scmp.ne.s32.totalorder %s2406_s0, %s1457_s7  ;;  %s19_s30 = int_to_ptr.vmem [resolvable:$true] %s18_s30 }
  0x16   :  { %p1461_p9 = scmp.lt.u32.totalorder %s1457_s7, %s2406_s0 }
  0x18   :  { %p1463_p10 = pnand %p1461_p9, %p1458_p8 }
  0x1a   :  { %1466 = shalt.err (!%p1463_p10)
}
  0x1b   :  { %s1467_s12 = scalar_lea.vmem %s19_s30, 2048  ;;  %p1472_p12 = scmp.lt.s32.totalorder %s19_s30, %s19_s30 }
  0x1c   :  { %p1468_p11 = scmp.ne.s32.totalorder %s19_s30, %s1467_s12  ;;  %p1473_p13 = scmp.lt.s32.totalorder %s1467_s12, %s1467_s12 }
  0x1e   :  { %p1474_p0 = por %p1473_p13, %p1472_p12 }
  0x20   :  { %p1475_p1 = pnand %p1474_p0, %p1468_p11 }
  0x22   :  { %1478 = shalt.err (!%p1475_p1)
}
  0x23   :  { %s1557_s1 = smov 128   ;;  %s1558_s13 = smov 8  }
  0x24   :  { %24 = dma.hbm_to_vmem [thread:$0]  %s2406_s0, 2048, %s19_s30, [#allocation3], %s1557_s1, %s1557_s1, %s1558_s13  }
  0x25   :  { %s1559_s16 = smov [#allocation7]   ;;  %s1560_s18 = smov [#allocation8]  }
  0x26   :  { %s43_s17 = sshll.u32 %s1559_s16, 4  ;;  %s53_s19 = sshll.u32 %s1560_s18, 4  ;;  %s44_s17 = int_to_ptr.vmem [resolvable:$true] %s43_s17  ;;  %s54_s19 = int_to_ptr.vmem [resolvable:$true] %s53_s19 }
  0x27   :  { %s1479_s22 = scalar_lea.hbm %s2408_s2, 64 }
  0x28   :  { %p1480_p2 = scmp.ne.s32.totalorder %s2408_s2, %s1479_s22  ;;  %p1483_p3 = scmp.lt.u32.totalorder %s1479_s22, %s2408_s2 }
  0x2a   :  { %p1485_p4 = pnand %p1483_p3, %p1480_p2 }
  0x2c   :  { %1488 = shalt.err (!%p1485_p4)
}
  0x2d   :  { %s1489_s0 = scalar_lea.vmem %s44_s17, 64  ;;  %p1494_p6 = scmp.lt.s32.totalorder %s44_s17, %s44_s17 }
  0x2e   :  { %p1490_p5 = scmp.ne.s32.totalorder %s44_s17, %s1489_s0  ;;  %p1495_p7 = scmp.lt.s32.totalorder %s1489_s0, %s1489_s0 }
  0x30   :  { %p1496_p8 = por %p1495_p7, %p1494_p6 }
  0x32   :  { %p1497_p9 = pnand %p1496_p8, %p1490_p5 }
  0x34   :  { %1500 = shalt.err (!%p1497_p9)
}
  0x35   :  { %46 = dma.hbm_to_vmem [thread:$0]  %s2408_s2, 64, %s44_s17, [#allocation6]  }
  0x36   :  { %s1501_s7 = scalar_lea.hbm %s2409_s3, 64 }
  0x37   :  { %p1502_p10 = scmp.ne.s32.totalorder %s2409_s3, %s1501_s7  ;;  %p1505_p11 = scmp.lt.u32.totalorder %s1501_s7, %s2409_s3 }
  0x39   :  { %p1507_p12 = pnand %p1505_p11, %p1502_p10 }
  0x3b   :  { %1510 = shalt.err (!%p1507_p12)
}
  0x3c   :  { %s1511_s12 = scalar_lea.vmem %s54_s19, 64  ;;  %p1516_p0 = scmp.lt.s32.totalorder %s54_s19, %s54_s19 }
  0x3d   :  { %p1512_p13 = scmp.ne.s32.totalorder %s54_s19, %s1511_s12  ;;  %p1517_p1 = scmp.lt.s32.totalorder %s1511_s12, %s1511_s12 }
  0x3f   :  { %p1518_p2 = por %p1517_p1, %p1516_p0 }
  0x41   :  { %p1519_p3 = pnand %p1518_p2, %p1512_p13 }
  0x43   :  { %1522 = shalt.err (!%p1519_p3)
}
  0x44   :  { %56 = dma.hbm_to_vmem [thread:$0]  %s2409_s3, 64, %s54_s19, [#allocation9]  }
  0x45   :  { %1545 = dma.done.wait [#allocation3], 2048  }
  0x46   :  { %1546 = vsyncadd [#allocation3], 4294965248 }
  0x47   :  { %1547 = dma.done.wait [#allocation6], 2112  }
  0x48   :  { %1548 = vsyncadd [#allocation6], 4294965184 }
  0x49   :  { %1549 = dma.done.wait [#allocation9], 64  }
  0x4a   :  { %1550 = vsyncadd [#allocation9], 4294967232  ;;  %v1561_v0 = vmov 0   ;;  %v1379_v1 = vld [vmem:[#allocation5 + $0x4] ss:$16 sps:$4 sm:$0xff]   ;;  %v71_v18 = vld [vmem:[#allocation2 + $0x8] sm:$0xff] }
  0x4b   :  { %247 = vmatprep.mubr.bf16.mxu0 %v1561_v0  ;;  %360 = vmatprep.mubr.bf16.mxu1 %v1561_v0  ;;  %v1381_v2 = vld [vmem:[#allocation5 + $0xc] ss:$16 sps:$4 sm:$0xff]   ;;  %v1383_v3 = vld [vmem:[#allocation5] ss:$16 sps:$4 sm:$0xff]   ;;  %v1384_v4 = vld [vmem:[#allocation5 + $0x8] ss:$16 sps:$4 sm:$0xff]  }
  0x4c   :  { %215 = vmatprep.subr.bf16.mxu0 %v1379_v1  ;;  %328 = vmatprep.subr.bf16.mxu1 %v1381_v2  ;;  %v1385_v5 = vld [vmem:[#allocation5 + $0x24] ss:$16 sps:$4 sm:$0xff]   ;;  %v1387_v6 = vld [vmem:[#allocation5 + $0x2c] ss:$16 sps:$4 sm:$0xff]   ;;  %v1389_v7 = vld [vmem:[#allocation5 + $0x20] ss:$16 sps:$4 sm:$0xff]  }
  0x4d   :  { %216 = vmatpush1.bf16.msra.mxu0 %v1383_v3  ;;  %329 = vmatpush1.bf16.msra.mxu1 %v1384_v4  ;;  %v1390_v8 = vld [vmem:[#allocation5 + $0x28] ss:$16 sps:$4 sm:$0xff]   ;;  %v1391_v9 = vld [vmem:[#allocation5 + $0x44] ss:$16 sps:$4 sm:$0xff]   ;;  %v1393_v10 = vld [vmem:[#allocation5 + $0x4c] ss:$16 sps:$4 sm:$0xff]  }
  0x4e   :  { %217 = vmatprep.subr.bf16.mxu0 %v1385_v5  ;;  %330 = vmatprep.subr.bf16.mxu1 %v1387_v6  ;;  %v1395_v11 = vld [vmem:[#allocation5 + $0x40] ss:$16 sps:$4 sm:$0xff]   ;;  %v1396_v12 = vld [vmem:[#allocation5 + $0x48] ss:$16 sps:$4 sm:$0xff]   ;;  %v1397_v13 = vld [vmem:[#allocation5 + $0x64] ss:$16 sps:$4 sm:$0xff]  }
  0x4f   :  { %v1399_v14 = vld [vmem:[#allocation5 + $0x6c] ss:$16 sps:$4 sm:$0xff]   ;;  %v1401_v15 = vld [vmem:[#allocation5 + $0x60] ss:$16 sps:$4 sm:$0xff]   ;;  %v1402_v16 = vld [vmem:[#allocation5 + $0x68] ss:$16 sps:$4 sm:$0xff]  }
  0x50   :  { %v70_v17 = vld [vmem:[#allocation2] sm:$0xff]  ;;  %vm190_vm0 = vcmask 523264   ;;  %v72_v20 = vld [vmem:[#allocation2 + $0x10] sm:$0xff]  ;;  %v73_v21 = vld [vmem:[#allocation2 + $0x18] sm:$0xff]  ;;  %s1562_s3 = smov [#allocation10]  }
  0x51   :  { %218 = vmatpush1.bf16.msra.mxu0 %v1389_v7  ;;  %331 = vmatpush1.bf16.msra.mxu1 %v1390_v8  ;;  %v86_v19 = vpack.c.bf16 %v71_v18, %v70_v17  ;;  %v87_v22 = vpack.c.bf16 %v73_v21, %v72_v20  ;;  %v74_v23 = vld [vmem:[#allocation2 + $0x20] sm:$0xff]  ;;  %v75_v24 = vld [vmem:[#allocation2 + $0x28] sm:$0xff]  ;;  %v76_v26 = vld [vmem:[#allocation2 + $0x30] sm:$0xff]  ;;  %s1259_s13 = sshll.u32 %s1562_s3, 4  ;;  %s1260_s13 = int_to_ptr.vmem [resolvable:$true] %s1259_s13 }
  0x52   :  { %219 = vmatprep.subr.bf16.mxu0 %v1391_v9  ;;  %332 = vmatprep.subr.bf16.mxu1 %v1393_v10  ;;  %v88_v25 = vpack.c.bf16 %v75_v24, %v74_v23  ;;  %v77_v27 = vld [vmem:[#allocation2 + $0x38] sm:$0xff]  ;;  %v78_v29 = vld [vmem:[#allocation2 + $0x40] sm:$0xff]  ;;  %v79_v30 = vld [vmem:[#allocation2 + $0x48] sm:$0xff]  ;;  %s1523_s14 = scalar_lea.vmem %s1260_s13, 4096  ;;  %p1528_p5 = scmp.lt.s32.totalorder %s1260_s13, %s1260_s13 }
  0x53   :  { %v89_v28 = vpack.c.bf16 %v77_v27, %v76_v26  ;;  %v90_v31 = vpack.c.bf16 %v79_v30, %v78_v29  ;;  %v80_v32 = vld [vmem:[#allocation2 + $0x50] sm:$0xff]  ;;  %v81_v33 = vld [vmem:[#allocation2 + $0x58] sm:$0xff]  ;;  %v82_v35 = vld [vmem:[#allocation2 + $0x60] sm:$0xff]  ;;  %p1524_p4 = scmp.ne.s32.totalorder %s1260_s13, %s1523_s14  ;;  %p1529_p6 = scmp.lt.s32.totalorder %s1523_s14, %s1523_s14 }
  0x54   :  { %v91_v34 = vpack.c.bf16 %v81_v33, %v80_v32  ;;  %v83_v36 = vld [vmem:[#allocation2 + $0x68] sm:$0xff]  ;;  %v84_v38 = vld [vmem:[#allocation2 + $0x70] sm:$0xff]  ;;  %v85_v39 = vld [vmem:[#allocation2 + $0x78] sm:$0xff] }
  0x55   :  { %220 = vmatpush1.bf16.msra.mxu0 %v1395_v11  ;;  %333 = vmatpush1.bf16.msra.mxu1 %v1396_v12  ;;  %v92_v37 = vpack.c.bf16 %v83_v36, %v82_v35  ;;  %v93_v40 = vpack.c.bf16 %v85_v39, %v84_v38  ;;  %p1530_p7 = por %p1529_p6, %p1528_p5 }
  0x56   :  { %221 = vmatprep.subr.bf16.mxu0 %v1397_v13  ;;  %334 = vmatprep.subr.bf16.mxu1 %v1399_v14 }
  0x57   :  { %p1531_p8 = pnand %p1530_p7, %p1524_p4 }
  0x59   :  { %222 = vmatpush1.bf16.msra.mxu0 %v1401_v15  ;;  %335 = vmatpush1.bf16.msra.mxu1 %v1402_v16 }
  0x5c   :  { %1289 = vmatmul.mubr.msk.bf16.vlgmr.msra.gmra.mrb[0].mxu0 %vm190_vm0, %v86_v19  ;;  %1297 = vmatmul.mubr.msk.bf16.vlgmr.msra.gmra.mrb[0].mxu1 %vm190_vm0, %v86_v19 }
  0x5d   :  { %257 = vmatprep.mubr.bf16.mxu0 %v1561_v0  ;;  %370 = vmatprep.mubr.bf16.mxu1 %v1561_v0 }
  0x64   :  { %1290 = vmatmul.mubr.msk.bf16.gmra.mrb[4].mxu0 %vm190_vm0, %v87_v22  ;;  %1298 = vmatmul.mubr.msk.bf16.gmra.mrb[4].mxu1 %vm190_vm0, %v87_v22 }
  0x65   :  { %267 = vmatprep.mubr.bf16.mxu0 %v1561_v0  ;;  %380 = vmatprep.mubr.bf16.mxu1 %v1561_v0 }
  0x6c   :  { %1291 = vmatmul.mubr.msk.bf16.gmra.mrb[8].mxu0 %vm190_vm0, %v88_v25  ;;  %1299 = vmatmul.mubr.msk.bf16.gmra.mrb[8].mxu1 %vm190_vm0, %v88_v25 }
  0x6d   :  { %277 = vmatprep.mubr.bf16.mxu0 %v1561_v0  ;;  %390 = vmatprep.mubr.bf16.mxu1 %v1561_v0 }
  0x74   :  { %1292 = vmatmul.mubr.msk.bf16.gmra.mrb[12].mxu0 %vm190_vm0, %v89_v28  ;;  %1300 = vmatmul.mubr.msk.bf16.gmra.mrb[12].mxu1 %vm190_vm0, %v89_v28 }
  0x75   :  { %287 = vmatprep.mubr.bf16.mxu0 %v1561_v0  ;;  %400 = vmatprep.mubr.bf16.mxu1 %v1561_v0 }
  0x7c   :  { %1293 = vmatmul.mubr.msk.bf16.gmra.mrb[16].mxu0 %vm190_vm0, %v90_v31  ;;  %1301 = vmatmul.mubr.msk.bf16.gmra.mrb[16].mxu1 %vm190_vm0, %v90_v31 }
  0x7d   :  { %297 = vmatprep.mubr.bf16.mxu0 %v1561_v0  ;;  %410 = vmatprep.mubr.bf16.mxu1 %v1561_v0 }
  0x84   :  { %1294 = vmatmul.mubr.msk.bf16.gmra.mrb[20].mxu0 %vm190_vm0, %v91_v34  ;;  %1302 = vmatmul.mubr.msk.bf16.gmra.mrb[20].mxu1 %vm190_vm0, %v91_v34 }
  0x85   :  { %307 = vmatprep.mubr.bf16.mxu0 %v1561_v0  ;;  %420 = vmatprep.mubr.bf16.mxu1 %v1561_v0 }
  0x8c   :  { %1295 = vmatmul.mubr.msk.bf16.gmra.mrb[24].mxu0 %vm190_vm0, %v92_v37  ;;  %1303 = vmatmul.mubr.msk.bf16.gmra.mrb[24].mxu1 %vm190_vm0, %v92_v37 }
  0x8d   :  { %317 = vmatprep.mubr.bf16.mxu0 %v1561_v0  ;;  %430 = vmatprep.mubr.bf16.mxu1 %v1561_v0 }
  0x94   :  { %1296 = vmatmul.mubr.msk.bf16.gmra.mrb[28].mxu0 %vm190_vm0, %v93_v40  ;;  %1304 = vmatmul.mubr.msk.bf16.gmra.mrb[28].mxu1 %vm190_vm0, %v93_v40 }
 0x12f   :  { %v1671_v41 = vpop.f32.mrb[0].mxu0  ;;  %v1673_v42 = vpop.f32.mrb[0].mxu1 }
 0x130   :  { %v1675_v43 = vpop.f32.mrb[1].mxu0  ;;  %v1677_v44 = vpop.f32.mrb[1].mxu1 }
 0x131   :  { %v443_v45 = vadd.f32 %v1675_v43, %v1671_v41  ;;  %v1681_v46 = vpop.f32.mrb[2].mxu0  ;;  %v1683_v47 = vpop.f32.mrb[2].mxu1 }
 0x132   :  { %v1685_v48 = vpop.f32.mrb[3].mxu0  ;;  %v1687_v49 = vpop.f32.mrb[3].mxu1 }
 0x133   :  { %v448_v50 = vadd.f32 %v1685_v48, %v1681_v46  ;;  %v444_v51 = vadd.f32 %v443_v45, %v1673_v42 }
 0x135   :  { %v445_v52 = vadd.f32 %v444_v51, %v1677_v44  ;;  %v449_v53 = vadd.f32 %v448_v50, %v1683_v47 }
 0x137   :  { %v1694_v54 = vpop.f32.mrb[4].mxu1  ;;  %446 = vadd.xlane.f32.xlu0 %v445_v52  ;;  %v1696_v55 = vpop.f32.mrb[4].mxu0  ;;  %v450_v56 = vadd.f32 %v449_v53, %v1687_v49 }
 0x138   :  { %v1699_v57 = vpop.f32.mrb[5].mxu0  ;;  %v1701_v58 = vpop.f32.mrb[5].mxu1 }
 0x139   :  { %v453_v59 = vadd.f32 %v1699_v57, %v1696_v55  ;;  %v1705_v60 = vpop.f32.mrb[6].mxu0  ;;  %v1707_v61 = vpop.f32.mrb[6].mxu1 }
 0x13a   :  { %v1709_v62 = vpop.f32.mrb[7].mxu0  ;;  %v1711_v63 = vpop.f32.mrb[7].mxu1 }
 0x13b   :  { %v458_v0 = vadd.f32 %v1709_v62, %v1705_v60  ;;  %451 = vadd.xlane.f32.xlu0 %v450_v56  ;;  %v454_v1 = vadd.f32 %v453_v59, %v1694_v54 }
 0x13d   :  { %v455_v2 = vadd.f32 %v454_v1, %v1701_v58  ;;  %v459_v3 = vadd.f32 %v458_v0, %v1707_v61 }
 0x13f   :  { %v1718_v4 = vpop.f32.mrb[8].mxu1  ;;  %456 = vadd.xlane.f32.xlu1 %v455_v2  ;;  %v1720_v5 = vpop.f32.mrb[8].mxu0  ;;  %v460_v6 = vadd.f32 %v459_v3, %v1711_v63 }
 0x140   :  { %v1723_v7 = vpop.f32.mrb[9].mxu0  ;;  %v1725_v8 = vpop.f32.mrb[9].mxu1 }
 0x141   :  { %v463_v9 = vadd.f32 %v1723_v7, %v1720_v5  ;;  %v1729_v10 = vpop.f32.mrb[10].mxu0  ;;  %v1731_v11 = vpop.f32.mrb[10].mxu1 }
 0x142   :  { %v1733_v12 = vpop.f32.mrb[11].mxu0  ;;  %v1735_v13 = vpop.f32.mrb[11].mxu1 }
 0x143   :  { %v468_v14 = vadd.f32 %v1733_v12, %v1729_v10  ;;  %461 = vadd.xlane.f32.xlu1 %v460_v6  ;;  %v464_v15 = vadd.f32 %v463_v9, %v1718_v4 }
 0x145   :  { %v465_v16 = vadd.f32 %v464_v15, %v1725_v8  ;;  %v469_v17 = vadd.f32 %v468_v14, %v1731_v11 }
 0x147   :  { %v1742_v18 = vpop.f32.mrb[12].mxu1  ;;  %466 = vadd.xlane.f32.xlu0 %v465_v16  ;;  %v1744_v19 = vpop.f32.mrb[12].mxu0  ;;  %v470_v20 = vadd.f32 %v469_v17, %v1735_v13 }
 0x148   :  { %v1747_v21 = vpop.f32.mrb[13].mxu0  ;;  %v1749_v22 = vpop.f32.mrb[13].mxu1 }
 0x149   :  { %v473_v23 = vadd.f32 %v1747_v21, %v1744_v19  ;;  %v1753_v24 = vpop.f32.mrb[14].mxu1  ;;  %471 = vadd.xlane.f32.xlu1 %v470_v20  ;;  %v1755_v25 = vpop.f32.mrb[14].mxu0 }
 0x14a   :  { %v1757_v26 = vpop.f32.mrb[15].mxu0  ;;  %v1759_v27 = vpop.f32.mrb[15].mxu1 }
 0x14b   :  { %v478_v28 = vadd.f32 %v1757_v26, %v1755_v25  ;;  %v474_v29 = vadd.f32 %v473_v23, %v1742_v18 }
 0x14d   :  { %v475_v30 = vadd.f32 %v474_v29, %v1749_v22  ;;  %v479_v31 = vadd.f32 %v478_v28, %v1753_v24 }
 0x14f   :  { %v1766_v32 = vpop.f32.mrb[16].mxu1  ;;  %476 = vadd.xlane.f32.xlu0 %v475_v30  ;;  %v1768_v33 = vpop.f32.mrb[16].mxu0  ;;  %v480_v34 = vadd.f32 %v479_v31, %v1759_v27 }
 0x150   :  { %v1771_v35 = vpop.f32.mrb[17].mxu0  ;;  %v1773_v36 = vpop.f32.mrb[17].mxu1 }
 0x151   :  { %v483_v37 = vadd.f32 %v1771_v35, %v1768_v33  ;;  %v1777_v38 = vpop.f32.mrb[18].mxu1  ;;  %481 = vadd.xlane.f32.xlu1 %v480_v34  ;;  %v1779_v39 = vpop.f32.mrb[18].mxu0 }
 0x152   :  { %v1781_v40 = vpop.f32.mrb[19].mxu0  ;;  %v1783_v45 = vpop.f32.mrb[19].mxu1 }
 0x153   :  { %v488_v50 = vadd.f32 %v1781_v40, %v1779_v39  ;;  %v484_v51 = vadd.f32 %v483_v37, %v1766_v32 }
 0x155   :  { %v485_v52 = vadd.f32 %v484_v51, %v1773_v36  ;;  %v489_v53 = vadd.f32 %v488_v50, %v1777_v38 }
 0x157   :  { %v1790_v56 = vpop.f32.mrb[20].mxu1  ;;  %486 = vadd.xlane.f32.xlu0 %v485_v52  ;;  %v1792_v59 = vpop.f32.mrb[20].mxu0  ;;  %v490_v0 = vadd.f32 %v489_v53, %v1783_v45 }
 0x158   :  { %v1795_v1 = vpop.f32.mrb[21].mxu0  ;;  %v1797_v2 = vpop.f32.mrb[21].mxu1 }
 0x159   :  { %v493_v3 = vadd.f32 %v1795_v1, %v1792_v59  ;;  %v1801_v6 = vpop.f32.mrb[22].mxu1  ;;  %491 = vadd.xlane.f32.xlu1 %v490_v0  ;;  %v1803_v9 = vpop.f32.mrb[22].mxu0 }
 0x15a   :  { %v1805_v14 = vpop.f32.mrb[23].mxu0  ;;  %v1807_v15 = vpop.f32.mrb[23].mxu1 }
 0x15b   :  { %v498_v16 = vadd.f32 %v1805_v14, %v1803_v9  ;;  %v494_v17 = vadd.f32 %v493_v3, %v1790_v56 }
 0x15d   :  { %v495_v20 = vadd.f32 %v494_v17, %v1797_v2  ;;  %v499_v23 = vadd.f32 %v498_v16, %v1801_v6 }
 0x15f   :  { %v1814_v28 = vpop.f32.mrb[24].mxu1  ;;  %496 = vadd.xlane.f32.xlu0 %v495_v20  ;;  %v1816_v29 = vpop.f32.mrb[24].mxu0  ;;  %v500_v30 = vadd.f32 %v499_v23, %v1807_v15 }
 0x160   :  { %2450 = vst [vmem:[#allocation15_spill] sm:$0xff] %v1814_v28  ;;  %2451 = vst [vmem:[#allocation16_spill] sm:$0xff] %v1816_v29  ;;  %v1819_v31 = vpop.f32.mrb[25].mxu0  ;;  %v1821_v34 = vpop.f32.mrb[25].mxu1 }
 0x161   :  { %2452 = vst [vmem:[#allocation17_spill] sm:$0xff] %v1819_v31  ;;  %2453 = vst [vmem:[#allocation18_spill] sm:$0xff] %v1821_v34  ;;  %v503_v37 = vadd.f32 %v1819_v31, %v1816_v29  ;;  %v1825_v50 = vpop.f32.mrb[26].mxu1  ;;  %501 = vadd.xlane.f32.xlu1 %v500_v30  ;;  %v1827_v51 = vpop.f32.mrb[26].mxu0 }
 0x162   :  { %2454 = vst [vmem:[#allocation19_spill] sm:$0xff] %v1825_v50  ;;  %2455 = vst [vmem:[#allocation20_spill] sm:$0xff] %v1827_v51  ;;  %v1829_v52 = vpop.f32.mrb[27].mxu0  ;;  %v1831_v53 = vpop.f32.mrb[27].mxu1 }
 0x163   :  { %2456 = vst [vmem:[#allocation21_spill] sm:$0xff] %v1829_v52  ;;  %2457 = vst [vmem:[#allocation22_spill] sm:$0xff] %v1831_v53  ;;  %v508_v0 = vadd.f32 %v1829_v52, %v1827_v51  ;;  %v504_v3 = vadd.f32 %v503_v37, %v1814_v28 }
 0x165   :  { %v505_v16 = vadd.f32 %v504_v3, %v1821_v34  ;;  %v509_v17 = vadd.f32 %v508_v0, %v1825_v50 }
 0x167   :  { %v1838_v20 = vpop.f32.mrb[28].mxu1  ;;  %506 = vadd.xlane.f32.xlu0 %v505_v16  ;;  %v1840_v23 = vpop.f32.mrb[28].mxu0  ;;  %v510_v30 = vadd.f32 %v509_v17, %v1831_v53 }
 0x168   :  { %2458 = vst [vmem:[#allocation23_spill] sm:$0xff] %v1840_v23  ;;  %v1843_v31 = vpop.f32.mrb[29].mxu0  ;;  %v1845_v29 = vpop.f32.mrb[29].mxu1 }
 0x169   :  { %2459 = vst [vmem:[#allocation24_spill] sm:$0xff] %v1843_v31  ;;  %v513_v52 = vadd.f32 %v1843_v31, %v1840_v23  ;;  %v1849_v51 = vpop.f32.mrb[30].mxu1  ;;  %511 = vadd.xlane.f32.xlu1 %v510_v30  ;;  %v1851_v37 = vpop.f32.mrb[30].mxu0 }
 0x16a   :  { %v1853_v0 = vpop.f32.mrb[31].mxu0  ;;  %v1855_v3 = vpop.f32.mrb[31].mxu1 }
 0x16b   :  { %2460 = vst [vmem:[#allocation25_spill] sm:$0xff] %v1853_v0  ;;  %v518_v16 = vadd.f32 %v1853_v0, %v1851_v37  ;;  %v514_v17 = vadd.f32 %v513_v52, %v1838_v20 }
 0x16d   :  { %v519_v53 = vadd.f32 %v518_v16, %v1849_v51  ;;  %v515_v50 = vadd.f32 %v514_v17, %v1845_v29 }
 0x16f   :  { %v520_v31 = vadd.f32 %v519_v53, %v1855_v3  ;;  %516 = vadd.xlane.f32.xlu0 %v515_v50 }
 0x171   :  { %521 = vadd.xlane.f32.xlu1 %v520_v31 }
 0x1c4   :  { %v447_v30 = vpop.xlane.xlu0 %446 }
 0x1c5   :  { %v524_v23 = vmul.f32 0.001953125, %v447_v30 }
 0x1c7   :  { %v1864_v34 = vsub.f32 %v1671_v41, %v524_v23  ;;  %v1867_v28 = vsub.f32 %v1675_v43, %v524_v23  ;;  %v1870_v0 = vsub.f32 %v1673_v42, %v524_v23  ;;  %v1873_v16 = vsub.f32 %v1677_v44, %v524_v23 }
 0x1c8   :  { %v452_v52 = vpop.xlane.xlu0 %451 }
 0x1c9   :  { %2461 = vst [vmem:[#allocation26_spill] sm:$0xff] %v1864_v34  ;;  %2462 = vst [vmem:[#allocation27_spill] sm:$0xff] %v1867_v28  ;;  %v525_v17 = vmul.f32 0.001953125, %v452_v52  ;;  %v604_v50 = vmul.f32 %v1864_v34, %v1864_v34  ;;  %v605_v31 = vmul.f32 %v1867_v28, %v1867_v28  ;;  %v606_v41 = vmul.f32 %v1870_v0, %v1870_v0 }
 0x1ca   :  { %2463 = vst [vmem:[#allocation28_spill] sm:$0xff] %v1873_v16  ;;  %v607_v30 = vmul.f32 %v1873_v16, %v1873_v16 }
 0x1cb   :  { %v1882_v43 = vsub.f32 %v1681_v46, %v525_v17  ;;  %v1885_v42 = vsub.f32 %v1685_v48, %v525_v17  ;;  %v668_v53 = vadd.f32 %v605_v31, %v604_v50  ;;  %v1888_v44 = vsub.f32 %v1683_v47, %v525_v17 }
 0x1cc   :  { %v457_v23 = vpop.xlane.xlu1 %456  ;;  %v1893_v52 = vsub.f32 %v1687_v49, %v525_v17 }
 0x1cd   :  { %2464 = vst [vmem:[#allocation29_spill] sm:$0xff] %v1885_v42  ;;  %2465 = vst [vmem:[#allocation30_spill] sm:$0xff] %v1888_v44  ;;  %v526_v28 = vmul.f32 0.001953125, %v457_v23  ;;  %v669_v34 = vadd.f32 %v668_v53, %v606_v41  ;;  %v608_v46 = vmul.f32 %v1882_v43, %v1882_v43  ;;  %v609_v48 = vmul.f32 %v1885_v42, %v1885_v42 }
 0x1ce   :  { %v610_v50 = vmul.f32 %v1888_v44, %v1888_v44  ;;  %v611_v41 = vmul.f32 %v1893_v52, %v1893_v52 }
 0x1cf   :  { %v1902_v47 = vsub.f32 %v1696_v55, %v526_v28  ;;  %v1905_v31 = vsub.f32 %v1699_v57, %v526_v28  ;;  %v670_v16 = vadd.f32 %v669_v34, %v607_v30  ;;  %v673_v49 = vadd.f32 %v609_v48, %v608_v46 }
 0x1d0   :  { %v462_v17 = vpop.xlane.xlu1 %461  ;;  %v1910_v53 = vsub.f32 %v1694_v54, %v526_v28  ;;  %v1913_v23 = vsub.f32 %v1701_v58, %v526_v28 }
 0x1d1   :  { %v527_v42 = vmul.f32 0.001953125, %v462_v17  ;;  %671 = vadd.xlane.f32.xlu0 %v670_v16  ;;  %v674_v44 = vadd.f32 %v673_v49, %v610_v50  ;;  %v612_v55 = vmul.f32 %v1902_v47, %v1902_v47  ;;  %v613_v57 = vmul.f32 %v1905_v31, %v1905_v31 }
 0x1d2   :  { %v614_v34 = vmul.f32 %v1910_v53, %v1910_v53  ;;  %v615_v16 = vmul.f32 %v1913_v23, %v1913_v23 }
 0x1d3   :  { %v1922_v30 = vsub.f32 %v1705_v60, %v527_v42  ;;  %v1925_v54 = vsub.f32 %v1709_v62, %v527_v42  ;;  %v675_v58 = vadd.f32 %v674_v44, %v611_v41  ;;  %v678_v28 = vadd.f32 %v613_v57, %v612_v55 }
 0x1d4   :  { %v467_v46 = vpop.xlane.xlu0 %466  ;;  %v1930_v48 = vsub.f32 %v1707_v61, %v527_v42  ;;  %v1937_v44 = vsub.f32 %v1711_v63, %v527_v42 }
 0x1d5   :  { %v528_v50 = vmul.f32 0.001953125, %v467_v46  ;;  %676 = vadd.xlane.f32.xlu1 %v675_v58  ;;  %v679_v49 = vadd.f32 %v678_v28, %v614_v34  ;;  %v616_v17 = vmul.f32 %v1922_v30, %v1922_v30  ;;  %v617_v60 = vmul.f32 %v1925_v54, %v1925_v54 }
 0x1d6   :  { %v472_v62 = vpop.xlane.xlu1 %471  ;;  %v618_v34 = vmul.f32 %v1930_v48, %v1930_v48 }
 0x1d7   :  { %v1940_v41 = vsub.f32 %v1720_v5, %v528_v50  ;;  %v1943_v55 = vsub.f32 %v1723_v7, %v528_v50  ;;  %v529_v61 = vmul.f32 0.001953125, %v472_v62  ;;  %v680_v57 = vadd.f32 %v679_v49, %v615_v16 }
 0x1d8   :  { %v683_v58 = vadd.f32 %v617_v60, %v616_v17  ;;  %v1948_v28 = vsub.f32 %v1718_v4, %v528_v50  ;;  %v1951_v46 = vsub.f32 %v1725_v8, %v528_v50  ;;  %v619_v4 = vmul.f32 %v1937_v44, %v1937_v44 }
 0x1d9   :  { %v1954_v63 = vsub.f32 %v1729_v10, %v529_v61  ;;  %v1957_v5 = vsub.f32 %v1733_v12, %v529_v61  ;;  %681 = vadd.xlane.f32.xlu0 %v680_v57  ;;  %v620_v7 = vmul.f32 %v1940_v41, %v1940_v41  ;;  %v621_v42 = vmul.f32 %v1943_v55, %v1943_v55 }
 0x1da   :  { %2466 = vst [vmem:[#allocation31_spill] sm:$0xff] %v1948_v28  ;;  %v684_v16 = vadd.f32 %v683_v58, %v618_v34  ;;  %v1966_v8 = vsub.f32 %v1731_v11, %v529_v61  ;;  %v622_v10 = vmul.f32 %v1948_v28, %v1948_v28  ;;  %v1975_v62 = vsub.f32 %v1735_v13, %v529_v61 }
 0x1db   :  { %2467 = vst [vmem:[#allocation32_spill] sm:$0xff] %v1957_v5  ;;  %v688_v50 = vadd.f32 %v621_v42, %v620_v7  ;;  %v624_v12 = vmul.f32 %v1954_v63, %v1954_v63  ;;  %v625_v49 = vmul.f32 %v1957_v5, %v1957_v5  ;;  %v623_v11 = vmul.f32 %v1951_v46, %v1951_v46 }
 0x1dc   :  { %v477_v17 = vpop.xlane.xlu0 %476  ;;  %v685_v60 = vadd.f32 %v684_v16, %v619_v4  ;;  %v626_v7 = vmul.f32 %v1966_v8, %v1966_v8  ;;  %v627_v61 = vmul.f32 %v1975_v62, %v1975_v62 }
 0x1dd   :  { %v530_v57 = vmul.f32 0.001953125, %v477_v17  ;;  %v689_v34 = vadd.f32 %v688_v50, %v622_v10  ;;  %v693_v58 = vadd.f32 %v625_v49, %v624_v12 }
 0x1de   :  { %686 = vadd.xlane.f32.xlu1 %v685_v60  ;;  %v482_v28 = vpop.xlane.xlu1 %481 }
 0x1df   :  { %v1982_v42 = vsub.f32 %v1744_v19, %v530_v57  ;;  %v1985_v5 = vsub.f32 %v1747_v21, %v530_v57  ;;  %v531_v4 = vmul.f32 0.001953125, %v482_v28  ;;  %v690_v13 = vadd.f32 %v689_v34, %v623_v11 }
 0x1e0   :  { %v694_v16 = vadd.f32 %v693_v58, %v626_v7  ;;  %v1990_v10 = vsub.f32 %v1742_v18, %v530_v57  ;;  %v1993_v50 = vsub.f32 %v1749_v22, %v530_v57 }
 0x1e1   :  { %v1996_v12 = vsub.f32 %v1755_v25, %v531_v4  ;;  %v1999_v19 = vsub.f32 %v1757_v26, %v531_v4  ;;  %691 = vadd.xlane.f32.xlu0 %v690_v13  ;;  %v628_v21 = vmul.f32 %v1982_v42, %v1982_v42  ;;  %v629_v28 = vmul.f32 %v1985_v5, %v1985_v5 }
 0x1e2   :  { %v695_v49 = vadd.f32 %v694_v16, %v627_v61  ;;  %v2006_v18 = vsub.f32 %v1753_v24, %v531_v4  ;;  %v630_v22 = vmul.f32 %v1990_v10, %v1990_v10  ;;  %v2015_v57 = vsub.f32 %v1759_v27, %v531_v4 }
 0x1e3   :  { %v698_v17 = vadd.f32 %v629_v28, %v628_v21  ;;  %v632_v25 = vmul.f32 %v1996_v12, %v1996_v12  ;;  %v633_v26 = vmul.f32 %v1999_v19, %v1999_v19  ;;  %v631_v24 = vmul.f32 %v1993_v50, %v1993_v50 }
 0x1e4   :  { %696 = vadd.xlane.f32.xlu1 %v695_v49  ;;  %v487_v60 = vpop.xlane.xlu0 %486  ;;  %v634_v13 = vmul.f32 %v2006_v18, %v2006_v18  ;;  %v635_v27 = vmul.f32 %v2015_v57, %v2015_v57 }
 0x1e5   :  { %v532_v11 = vmul.f32 0.001953125, %v487_v60  ;;  %v699_v34 = vadd.f32 %v698_v17, %v630_v22  ;;  %v703_v58 = vadd.f32 %v633_v26, %v632_v25 }
 0x1e6   :  { %v492_v7 = vpop.xlane.xlu1 %491 }
 0x1e7   :  { %v2022_v61 = vsub.f32 %v1768_v33, %v532_v11  ;;  %v2025_v16 = vsub.f32 %v1771_v35, %v532_v11  ;;  %v533_v21 = vmul.f32 0.001953125, %v492_v7  ;;  %v700_v28 = vadd.f32 %v699_v34, %v631_v24 }
 0x1e8   :  { %v704_v4 = vadd.f32 %v703_v58, %v634_v13  ;;  %v2030_v49 = vsub.f32 %v1766_v32, %v532_v11  ;;  %v2033_v22 = vsub.f32 %v1773_v36, %v532_v11 }
 0x1e9   :  { %v2036_v17 = vsub.f32 %v1779_v39, %v533_v21  ;;  %v2039_v33 = vsub.f32 %v1781_v40, %v533_v21  ;;  %701 = vadd.xlane.f32.xlu0 %v700_v28  ;;  %v636_v35 = vmul.f32 %v2022_v61, %v2022_v61  ;;  %v637_v25 = vmul.f32 %v2025_v16, %v2025_v16 }
 0x1ea   :  { %v705_v26 = vadd.f32 %v704_v4, %v635_v27  ;;  %v2046_v32 = vsub.f32 %v1777_v38, %v533_v21  ;;  %v638_v36 = vmul.f32 %v2030_v49, %v2030_v49  ;;  %v2055_v24 = vsub.f32 %v1783_v45, %v533_v21 }
 0x1eb   :  { %v708_v60 = vadd.f32 %v637_v25, %v636_v35  ;;  %v640_v39 = vmul.f32 %v2036_v17, %v2036_v17  ;;  %v641_v40 = vmul.f32 %v2039_v33, %v2039_v33  ;;  %v639_v38 = vmul.f32 %v2033_v22, %v2033_v22 }
 0x1ec   :  { %706 = vadd.xlane.f32.xlu1 %v705_v26  ;;  %v497_v11 = vpop.xlane.xlu0 %496  ;;  %v642_v28 = vmul.f32 %v2046_v32, %v2046_v32  ;;  %v643_v45 = vmul.f32 %v2055_v24, %v2055_v24 }
 0x1ed   :  { %v534_v34 = vmul.f32 0.001953125, %v497_v11  ;;  %v709_v58 = vadd.f32 %v708_v60, %v638_v36  ;;  %v713_v7 = vadd.f32 %v641_v40, %v640_v39 }
 0x1ee   :  { %v502_v13 = vpop.xlane.xlu1 %501 }
 0x1ef   :  { %v2062_v27 = vsub.f32 %v1792_v59, %v534_v34  ;;  %v2065_v4 = vsub.f32 %v1795_v1, %v534_v34  ;;  %v535_v35 = vmul.f32 0.001953125, %v502_v13  ;;  %v710_v25 = vadd.f32 %v709_v58, %v639_v38 }
 0x1f0   :  { %v714_v21 = vadd.f32 %v713_v7, %v642_v28  ;;  %v2070_v26 = vsub.f32 %v1790_v56, %v534_v34  ;;  %v2073_v36 = vsub.f32 %v1797_v2, %v534_v34 }
 0x1f1   :  { %v2076_v60 = vsub.f32 %v1803_v9, %v535_v35  ;;  %v2079_v59 = vsub.f32 %v1805_v14, %v535_v35  ;;  %711 = vadd.xlane.f32.xlu0 %v710_v25  ;;  %v644_v1 = vmul.f32 %v2062_v27, %v2062_v27  ;;  %v645_v39 = vmul.f32 %v2065_v4, %v2065_v4 }
 0x1f2   :  { %2468 = vst [vmem:[#allocation33_spill] sm:$0xff] %v2073_v36  ;;  %v715_v40 = vadd.f32 %v714_v21, %v643_v45  ;;  %v2086_v56 = vsub.f32 %v1801_v6, %v535_v35  ;;  %v646_v2 = vmul.f32 %v2070_v26, %v2070_v26  ;;  %v2095_v38 = vsub.f32 %v1807_v15, %v535_v35  ;;  %v2473_v45 = vld [vmem:[#allocation16_spill] sm:$0xff] }
 0x1f3   :  { %2469 = vst [vmem:[#allocation34_spill] sm:$0xff] %v2076_v60  ;;  %2470 = vst [vmem:[#allocation35_spill] sm:$0xff] %v2079_v59  ;;  %v718_v11 = vadd.f32 %v645_v39, %v644_v1  ;;  %v648_v9 = vmul.f32 %v2076_v60, %v2076_v60  ;;  %v649_v14 = vmul.f32 %v2079_v59, %v2079_v59  ;;  %v2475_v1 = vld [vmem:[#allocation17_spill] sm:$0xff] }
 0x1f4   :  { %2471 = vst [vmem:[#allocation36_spill] sm:$0xff] %v2086_v56  ;;  %716 = vadd.xlane.f32.xlu1 %v715_v40  ;;  %v507_v34 = vpop.xlane.xlu0 %506  ;;  %2472 = vst [vmem:[#allocation37_spill] sm:$0xff] %v2095_v38  ;;  %v647_v6 = vmul.f32 %v2073_v36, %v2073_v36  ;;  %v650_v25 = vmul.f32 %v2086_v56, %v2086_v56  ;;  %v651_v15 = vmul.f32 %v2095_v38, %v2095_v38 }
 0x1f5   :  { %v536_v58 = vmul.f32 0.001953125, %v507_v34  ;;  %v719_v7 = vadd.f32 %v718_v11, %v646_v2  ;;  %v723_v13 = vadd.f32 %v649_v14, %v648_v9  ;;  %v2477_v34 = vld [vmem:[#allocation15_spill] sm:$0xff]  ;;  %v2479_v2 = vld [vmem:[#allocation18_spill] sm:$0xff]  ;;  %v2481_v9 = vld [vmem:[#allocation20_spill] sm:$0xff] }
 0x1f6   :  { %v512_v28 = vpop.xlane.xlu1 %511 }
 0x1f7   :  { %v2102_v21 = vsub.f32 %v2473_v45, %v536_v58  ;;  %v2105_v39 = vsub.f32 %v2475_v1, %v536_v58  ;;  %v537_v40 = vmul.f32 0.001953125, %v512_v28  ;;  %v720_v59 = vadd.f32 %v719_v7, %v647_v6  ;;  %v2483_v45 = vld [vmem:[#allocation21_spill] sm:$0xff]  ;;  %v2485_v28 = vld [vmem:[#allocation19_spill] sm:$0xff] }
 0x1f8   :  { %v724_v35 = vadd.f32 %v723_v13, %v650_v25  ;;  %v2110_v60 = vsub.f32 %v2477_v34, %v536_v58  ;;  %v2113_v11 = vsub.f32 %v2479_v2, %v536_v58 }
 0x1f9   :  { %2474 = vst [vmem:[#allocation16_spill] sm:$0xff] %v2102_v21  ;;  %2476 = vst [vmem:[#allocation17_spill] sm:$0xff] %v2105_v39  ;;  %v2116_v14 = vsub.f32 %v2481_v9, %v537_v40  ;;  %v2119_v56 = vsub.f32 %v2483_v45, %v537_v40  ;;  %721 = vadd.xlane.f32.xlu0 %v720_v59  ;;  %v652_v6 = vmul.f32 %v2102_v21, %v2102_v21  ;;  %v2487_v9 = vld [vmem:[#allocation22_spill] sm:$0xff] }
 0x1fa   :  { %2478 = vst [vmem:[#allocation15_spill] sm:$0xff] %v2110_v60  ;;  %2480 = vst [vmem:[#allocation18_spill] sm:$0xff] %v2113_v11  ;;  %v653_v7 = vmul.f32 %v2105_v39, %v2105_v39  ;;  %v725_v13 = vadd.f32 %v724_v35, %v651_v15  ;;  %v2126_v25 = vsub.f32 %v2485_v28, %v537_v40 }
 0x1fb   :  { %2482 = vst [vmem:[#allocation20_spill] sm:$0xff] %v2116_v14  ;;  %2484 = vst [vmem:[#allocation21_spill] sm:$0xff] %v2119_v56  ;;  %v654_v58 = vmul.f32 %v2110_v60, %v2110_v60  ;;  %v656_v34 = vmul.f32 %v2116_v14, %v2116_v14  ;;  %v657_v59 = vmul.f32 %v2119_v56, %v2119_v56  ;;  %v2491_v60 = vld [vmem:[#allocation24_spill] sm:$0xff] }
 0x1fc   :  { %2486 = vst [vmem:[#allocation19_spill] sm:$0xff] %v2126_v25  ;;  %v728_v1 = vadd.f32 %v653_v7, %v652_v6  ;;  %726 = vadd.xlane.f32.xlu1 %v725_v13  ;;  %v517_v2 = vpop.xlane.xlu0 %516  ;;  %v2135_v45 = vsub.f32 %v2487_v9, %v537_v40  ;;  %v655_v15 = vmul.f32 %v2113_v11, %v2113_v11  ;;  %v2489_v7 = vld [vmem:[#allocation23_spill] sm:$0xff] }
 0x1fd   :  { %v538_v39 = vmul.f32 0.001953125, %v517_v2  ;;  %v733_v28 = vadd.f32 %v657_v59, %v656_v34  ;;  %v658_v6 = vmul.f32 %v2126_v25, %v2126_v25  ;;  %v2496_v34 = vld [vmem:[#allocation25_spill] sm:$0xff] }
 0x1fe   :  { %2488 = vst [vmem:[#allocation22_spill] sm:$0xff] %v2135_v45  ;;  %v729_v35 = vadd.f32 %v728_v1, %v654_v58  ;;  %v522_v21 = vpop.xlane.xlu1 %521  ;;  %v659_v40 = vmul.f32 %v2135_v45, %v2135_v45 }
 0x1ff   :  { %v2142_v14 = vsub.f32 %v2489_v7, %v538_v39  ;;  %v2145_v56 = vsub.f32 %v2491_v60, %v538_v39  ;;  %v539_v13 = vmul.f32 0.001953125, %v522_v21  ;;  %v734_v2 = vadd.f32 %v733_v28, %v658_v6 }
 0x200   :  { %v730_v38 = vadd.f32 %v729_v35, %v655_v15  ;;  %v2150_v9 = vsub.f32 %v1838_v20, %v538_v39  ;;  %v2153_v58 = vsub.f32 %v1845_v29, %v538_v39 }
 0x201   :  { %2490 = vst [vmem:[#allocation23_spill] sm:$0xff] %v2142_v14  ;;  %2492 = vst [vmem:[#allocation24_spill] sm:$0xff] %v2145_v56  ;;  %v2156_v1 = vsub.f32 %v1851_v37, %v539_v13  ;;  %v2159_v59 = vsub.f32 %v2496_v34, %v539_v13  ;;  %v660_v60 = vmul.f32 %v2142_v14, %v2142_v14 }
 0x202   :  { %2493 = vst [vmem:[#allocation38_spill] sm:$0xff] %v2150_v9  ;;  %2494 = vst [vmem:[#allocation39_spill] sm:$0xff] %v2153_v58  ;;  %731 = vadd.xlane.f32.xlu0 %v730_v38  ;;  %v661_v21 = vmul.f32 %v2145_v56, %v2145_v56  ;;  %v735_v15 = vadd.f32 %v734_v2, %v659_v40  ;;  %v662_v20 = vmul.f32 %v2150_v9, %v2150_v9  ;;  %v2502_v56 = vld [vmem:[#allocation28_spill] sm:$0xff] }
 0x203   :  { %2495 = vst [vmem:[#allocation40_spill] sm:$0xff] %v2156_v1  ;;  %2497 = vst [vmem:[#allocation25_spill] sm:$0xff] %v2159_v59  ;;  %v2168_v29 = vsub.f32 %v1849_v51, %v539_v13  ;;  %v2171_v37 = vsub.f32 %v1855_v3, %v539_v13  ;;  %v664_v38 = vmul.f32 %v2156_v1, %v2156_v1 }
 0x204   :  { %v738_v39 = vadd.f32 %v661_v21, %v660_v60  ;;  %v665_v35 = vmul.f32 %v2159_v59, %v2159_v59  ;;  %736 = vadd.xlane.f32.xlu1 %v735_v15  ;;  %v663_v28 = vmul.f32 %v2153_v58, %v2153_v58  ;;  %v861_v60 = vlaneseq }
 0x205   :  { %2498 = vst [vmem:[#allocation41_spill] sm:$0xff] %v2168_v29  ;;  %2499 = vst [vmem:[#allocation42_spill] sm:$0xff] %v2171_v37  ;;  %v666_v7 = vmul.f32 %v2168_v29, %v2168_v29  ;;  %v667_v3 = vmul.f32 %v2171_v37, %v2171_v37 }
 0x206   :  { %v739_v6 = vadd.f32 %v738_v39, %v662_v20  ;;  %v743_v51 = vadd.f32 %v665_v35, %v664_v38  ;;  %v862_v1 = vshrl.u32 %v861_v60, 7  ;;  %v441_v35 = vld [vmem:[#allocation7] sm:$0xf] }
 0x208   :  { %v740_v40 = vadd.f32 %v739_v6, %v663_v28  ;;  %v744_v13 = vadd.f32 %v743_v51, %v666_v7  ;;  %v863_v29 = vsub.s32 0, %v862_v1  ;;  %v867_v28 = vsub.s32 1, %v862_v1 }
 0x209   :  { %v871_v6 = vsub.s32 2, %v862_v1  ;;  %v875_v7 = vsub.s32 3, %v862_v1 }
 0x20a   :  { %741 = vadd.xlane.f32.xlu0 %v740_v40  ;;  %v745_v2 = vadd.f32 %v744_v13, %v667_v3  ;;  %v442_v40 = vld [vmem:[#allocation8] sm:$0xf]  ;;  %v2183_v3 = vrot.slane %v441_v35, %v863_v29 }
 0x20b   :  { %v2197_v1 = vrot.slane %v442_v40, %v875_v7 }
 0x20c   :  { %746 = vadd.xlane.f32.xlu1 %v745_v2  ;;  %v2185_v2 = vrot.slane %v441_v35, %v867_v28 }
 0x25e   :  { %v672_v34 = vpop.xlane.xlu0 %671 }
 0x25f   :  { %v748_v21 = vmul.f32 0.001953125, %v672_v34  ;;  %v2187_v34 = vrot.slane %v441_v35, %v871_v6 }
 0x261   :  { %v764_v15 = vadd.f32 1e-05, %v748_v21 }
 0x262   :  { %v677_v59 = vpop.xlane.xlu1 %676 }
 0x263   :  { %1403 = vrsqrt.f32 %v764_v15  ;;  %v749_v20 = vmul.f32 0.001953125, %v677_v59  ;;  %v2189_v59 = vrot.slane %v441_v35, %v875_v7  ;;  %v2191_v15 = vrot.slane %v442_v40, %v863_v29 }
 0x265   :  { %v765_v39 = vadd.f32 1e-05, %v749_v20  ;;  %v2195_v20 = vrot.slane %v442_v40, %v871_v6 }
 0x266   :  { %v682_v58 = vpop.xlane.xlu0 %681 }
 0x267   :  { %1405 = vrsqrt.f32 %v765_v39  ;;  %v750_v38 = vmul.f32 0.001953125, %v682_v58  ;;  %v2193_v58 = vrot.slane %v442_v40, %v867_v28  ;;  %v2500_v39 = vld [vmem:[#allocation26_spill] sm:$0xff] }
 0x269   :  { %v766_v51 = vadd.f32 1e-05, %v750_v38 }
 0x26b   :  { %1407 = vrsqrt.f32 %v766_v51  ;;  %v687_v13 = vpop.xlane.xlu1 %686  ;;  %v2501_v51 = vld [vmem:[#allocation27_spill] sm:$0xff] }
 0x26c   :  { %v751_v60 = vmul.f32 0.001953125, %v687_v13 }
 0x26d   :  { %v1404_v21 = vpop.eup %1403 }
 0x26e   :  { %v796_v38 = vmul.f32 %v1404_v21, %v2500_v39  ;;  %v797_v37 = vmul.f32 %v1404_v21, %v2501_v51  ;;  %v798_v9 = vmul.f32 %v1404_v21, %v1870_v0  ;;  %v799_v14 = vmul.f32 %v1404_v21, %v2502_v56  ;;  %v692_v35 = vpop.xlane.xlu0 %691 }
 0x26f   :  { %v767_v45 = vadd.f32 1e-05, %v751_v60  ;;  %v752_v13 = vmul.f32 0.001953125, %v692_v35  ;;  %v2504_v35 = vld [vmem:[#allocation30_spill] sm:$0xff] }
 0x270   :  { %v881_v29 = vmul.f32 %v2183_v3, %v796_v38  ;;  %v882_v28 = vmul.f32 %v2185_v2, %v797_v37  ;;  %v883_v6 = vmul.f32 %v2187_v34, %v798_v9  ;;  %v884_v7 = vmul.f32 %v2189_v59, %v799_v14  ;;  %v2503_v38 = vld [vmem:[#allocation29_spill] sm:$0xff] }
 0x271   :  { %v1406_v40 = vpop.eup %1405  ;;  %1409 = vrsqrt.f32 %v767_v45  ;;  %v768_v39 = vadd.f32 1e-05, %v752_v13  ;;  %v697_v25 = vpop.xlane.xlu1 %696 }
 0x272   :  { %v966_v51 = vadd.f32 %v2191_v15, %v881_v29  ;;  %v967_v0 = vadd.f32 %v2193_v58, %v882_v28  ;;  %v968_v56 = vadd.f32 %v2195_v20, %v883_v6  ;;  %v969_v60 = vadd.f32 %v2197_v1, %v884_v7 }
 0x273   :  { %v800_v21 = vmul.f32 %v1406_v40, %v1882_v43  ;;  %v801_v37 = vmul.f32 %v1406_v40, %v2503_v38  ;;  %v802_v9 = vmul.f32 %v1406_v40, %v2504_v35  ;;  %v803_v14 = vmul.f32 %v1406_v40, %v1893_v52 }
 0x274   :  { %v1337_v11 = vpack.c.bf16 %v967_v0, %v966_v51  ;;  %v1338_v45 = vpack.c.bf16 %v969_v60, %v968_v56  ;;  %1411 = vrsqrt.f32 %v768_v39  ;;  %v753_v13 = vmul.f32 0.001953125, %v697_v25 }
 0x275   :  { %v1408_v36 = vpop.eup %1407  ;;  %v885_v29 = vmul.f32 %v2183_v3, %v800_v21  ;;  %v886_v28 = vmul.f32 %v2185_v2, %v801_v37  ;;  %v887_v6 = vmul.f32 %v2187_v34, %v802_v9  ;;  %v888_v7 = vmul.f32 %v2189_v59, %v803_v14 }
 0x276   :  { %1222 = vst [vmem:[#allocation10] sm:$0xff] %v1337_v11  ;;  %1223 = vst [vmem:[#allocation10 + $0x8] sm:$0xff] %v1338_v45  ;;  %v804_v43 = vmul.f32 %v1408_v36, %v1902_v47  ;;  %v805_v38 = vmul.f32 %v1408_v36, %v1905_v31  ;;  %v806_v52 = vmul.f32 %v1408_v36, %v1910_v53  ;;  %v702_v25 = vpop.xlane.xlu0 %701 }
 0x277   :  { %v807_v40 = vmul.f32 %v1408_v36, %v1913_v23  ;;  %v970_v39 = vadd.f32 %v2191_v15, %v885_v29  ;;  %v971_v51 = vadd.f32 %v2193_v58, %v886_v28  ;;  %v972_v0 = vadd.f32 %v2195_v20, %v887_v6 }
 0x278   :  { %v973_v56 = vadd.f32 %v2197_v1, %v888_v7  ;;  %v889_v11 = vmul.f32 %v2183_v3, %v804_v43  ;;  %v890_v60 = vmul.f32 %v2185_v2, %v805_v38  ;;  %v891_v47 = vmul.f32 %v2187_v34, %v806_v52 }
 0x279   :  { %v892_v31 = vmul.f32 %v2189_v59, %v807_v40  ;;  %v1339_v53 = vpack.c.bf16 %v971_v51, %v970_v39  ;;  %v769_v23 = vadd.f32 1e-05, %v753_v13  ;;  %v754_v36 = vmul.f32 0.001953125, %v702_v25  ;;  %v707_v37 = vpop.xlane.xlu1 %706 }
 0x27a   :  { %v1340_v21 = vpack.c.bf16 %v973_v56, %v972_v0  ;;  %v974_v35 = vadd.f32 %v2191_v15, %v889_v11  ;;  %v975_v9 = vadd.f32 %v2193_v58, %v890_v60  ;;  %v976_v14 = vadd.f32 %v2195_v20, %v891_v47  ;;  %v2505_v60 = vld [vmem:[#allocation31_spill] sm:$0xff] }
 0x27b   :  { %v977_v45 = vadd.f32 %v2197_v1, %v892_v31  ;;  %v1410_v29 = vpop.eup %1409  ;;  %1224 = vst [vmem:[#allocation10 + $0x10] sm:$0xff] %v1339_v53  ;;  %1413 = vrsqrt.f32 %v769_v23  ;;  %v770_v28 = vadd.f32 1e-05, %v754_v36  ;;  %v755_v6 = vmul.f32 0.001953125, %v707_v37 }
 0x27c   :  { %1225 = vst [vmem:[#allocation10 + $0x18] sm:$0xff] %v1340_v21  ;;  %v1341_v7 = vpack.c.bf16 %v975_v9, %v974_v35  ;;  %v808_v13 = vmul.f32 %v1410_v29, %v1922_v30  ;;  %v809_v38 = vmul.f32 %v1410_v29, %v1925_v54  ;;  %v810_v52 = vmul.f32 %v1410_v29, %v1930_v48 }
 0x27d   :  { %v1342_v43 = vpack.c.bf16 %v977_v45, %v976_v14  ;;  %v811_v40 = vmul.f32 %v1410_v29, %v1937_v44  ;;  %1415 = vrsqrt.f32 %v770_v28  ;;  %v771_v0 = vadd.f32 1e-05, %v755_v6 }
 0x27e   :  { %v1412_v25 = vpop.eup %1411  ;;  %1226 = vst [vmem:[#allocation10 + $0x20] sm:$0xff] %v1341_v7  ;;  %v893_v39 = vmul.f32 %v2183_v3, %v808_v13  ;;  %v894_v51 = vmul.f32 %v2185_v2, %v809_v38  ;;  %v895_v56 = vmul.f32 %v2187_v34, %v810_v52  ;;  %v712_v53 = vpop.xlane.xlu0 %711 }
 0x27f   :  { %1227 = vst [vmem:[#allocation10 + $0x28] sm:$0xff] %v1342_v43  ;;  %v896_v11 = vmul.f32 %v2189_v59, %v811_v40  ;;  %v812_v30 = vmul.f32 %v1412_v25, %v1940_v41  ;;  %v813_v54 = vmul.f32 %v1412_v25, %v1943_v55  ;;  %v814_v47 = vmul.f32 %v1412_v25, %v2505_v60 }
 0x280   :  { %v978_v48 = vadd.f32 %v2191_v15, %v893_v39  ;;  %v979_v44 = vadd.f32 %v2193_v58, %v894_v51  ;;  %v815_v31 = vmul.f32 %v1412_v25, %v1951_v46  ;;  %v980_v21 = vadd.f32 %v2195_v20, %v895_v56  ;;  %v2506_v25 = vld [vmem:[#allocation32_spill] sm:$0xff] }
 0x281   :  { %v981_v23 = vadd.f32 %v2197_v1, %v896_v11  ;;  %v897_v36 = vmul.f32 %v2183_v3, %v812_v30  ;;  %v898_v37 = vmul.f32 %v2185_v2, %v813_v54  ;;  %v717_v41 = vpop.xlane.xlu1 %716  ;;  %v899_v55 = vmul.f32 %v2187_v34, %v814_v47 }
 0x282   :  { %v1343_v35 = vpack.c.bf16 %v979_v44, %v978_v48  ;;  %v900_v9 = vmul.f32 %v2189_v59, %v815_v31  ;;  %1417 = vrsqrt.f32 %v771_v0  ;;  %v756_v29 = vmul.f32 0.001953125, %v712_v53 }
 0x283   :  { %v1344_v14 = vpack.c.bf16 %v981_v23, %v980_v21  ;;  %v982_v45 = vadd.f32 %v2191_v15, %v897_v36  ;;  %v983_v46 = vadd.f32 %v2193_v58, %v898_v37  ;;  %v984_v28 = vadd.f32 %v2195_v20, %v899_v55 }
 0x284   :  { %1228 = vst [vmem:[#allocation10 + $0x30] sm:$0xff] %v1343_v35  ;;  %v985_v6 = vadd.f32 %v2197_v1, %v900_v9  ;;  %v757_v7 = vmul.f32 0.001953125, %v717_v41  ;;  %v772_v38 = vadd.f32 1e-05, %v756_v29 }
 0x285   :  { %v1414_v43 = vpop.eup %1413  ;;  %1229 = vst [vmem:[#allocation10 + $0x38] sm:$0xff] %v1344_v14  ;;  %v1345_v13 = vpack.c.bf16 %v983_v46, %v982_v45 }
 0x286   :  { %v1346_v52 = vpack.c.bf16 %v985_v6, %v984_v28  ;;  %v816_v40 = vmul.f32 %v1414_v43, %v1954_v63  ;;  %v817_v39 = vmul.f32 %v1414_v43, %v2506_v25  ;;  %v818_v51 = vmul.f32 %v1414_v43, %v1966_v8  ;;  %v722_v0 = vpop.xlane.xlu0 %721 }
 0x287   :  { %v1416_v56 = vpop.eup %1415  ;;  %1230 = vst [vmem:[#allocation10 + $0x40] sm:$0xff] %v1345_v13  ;;  %v819_v11 = vmul.f32 %v1414_v43, %v1975_v62  ;;  %1419 = vrsqrt.f32 %v772_v38  ;;  %v773_v30 = vadd.f32 1e-05, %v757_v7  ;;  %v758_v54 = vmul.f32 0.001953125, %v722_v0 }
 0x288   :  { %1231 = vst [vmem:[#allocation10 + $0x48] sm:$0xff] %v1346_v52  ;;  %v901_v48 = vmul.f32 %v2183_v3, %v816_v40  ;;  %v902_v44 = vmul.f32 %v2185_v2, %v817_v39  ;;  %v903_v60 = vmul.f32 %v2187_v34, %v818_v51  ;;  %v820_v63 = vmul.f32 %v1416_v56, %v1982_v42 }
 0x289   :  { %v904_v47 = vmul.f32 %v2189_v59, %v819_v11  ;;  %v821_v8 = vmul.f32 %v1416_v56, %v1985_v5  ;;  %v822_v31 = vmul.f32 %v1416_v56, %v1990_v10  ;;  %v823_v62 = vmul.f32 %v1416_v56, %v1993_v50  ;;  %v727_v9 = vpop.xlane.xlu1 %726 }
 0x28a   :  { %v986_v53 = vadd.f32 %v2191_v15, %v901_v48  ;;  %v987_v21 = vadd.f32 %v2193_v58, %v902_v44  ;;  %v988_v23 = vadd.f32 %v2195_v20, %v903_v60  ;;  %v905_v36 = vmul.f32 %v2183_v3, %v820_v63 }
 0x28b   :  { %v989_v37 = vadd.f32 %v2197_v1, %v904_v47  ;;  %v906_v42 = vmul.f32 %v2185_v2, %v821_v8  ;;  %v907_v41 = vmul.f32 %v2187_v34, %v822_v31  ;;  %v908_v5 = vmul.f32 %v2189_v59, %v823_v62 }
 0x28c   :  { %v1418_v35 = vpop.eup %1417  ;;  %v1347_v10 = vpack.c.bf16 %v987_v21, %v986_v53  ;;  %v990_v50 = vadd.f32 %v2191_v15, %v905_v36  ;;  %1421 = vrsqrt.f32 %v773_v30  ;;  %v774_v55 = vadd.f32 1e-05, %v758_v54 }
 0x28d   :  { %v1348_v14 = vpack.c.bf16 %v989_v37, %v988_v23  ;;  %v991_v45 = vadd.f32 %v2193_v58, %v906_v42  ;;  %v992_v46 = vadd.f32 %v2195_v20, %v907_v41  ;;  %v993_v29 = vadd.f32 %v2197_v1, %v908_v5 }
 0x28e   :  { %1232 = vst [vmem:[#allocation10 + $0x50] sm:$0xff] %v1347_v10  ;;  %v824_v28 = vmul.f32 %v1418_v35, %v1996_v12  ;;  %v825_v6 = vmul.f32 %v1418_v35, %v1999_v19  ;;  %v826_v7 = vmul.f32 %v1418_v35, %v2006_v18  ;;  %v827_v43 = vmul.f32 %v1418_v35, %v2015_v57 }
 0x28f   :  { %v732_v13 = vpop.xlane.xlu0 %731  ;;  %1233 = vst [vmem:[#allocation10 + $0x58] sm:$0xff] %v1348_v14  ;;  %v1349_v38 = vpack.c.bf16 %v991_v45, %v990_v50  ;;  %v1350_v52 = vpack.c.bf16 %v993_v29, %v992_v46  ;;  %1423 = vrsqrt.f32 %v774_v55  ;;  %v759_v40 = vmul.f32 0.001953125, %v727_v9 }
 0x290   :  { %v909_v25 = vmul.f32 %v2183_v3, %v824_v28  ;;  %v910_v39 = vmul.f32 %v2185_v2, %v825_v6  ;;  %v911_v51 = vmul.f32 %v2187_v34, %v826_v7  ;;  %v912_v12 = vmul.f32 %v2189_v59, %v827_v43 }
 0x291   :  { %v1420_v0 = vpop.eup %1419  ;;  %1234 = vst [vmem:[#allocation10 + $0x60] sm:$0xff] %v1349_v38  ;;  %1235 = vst [vmem:[#allocation10 + $0x68] sm:$0xff] %v1350_v52  ;;  %v775_v19 = vadd.f32 1e-05, %v759_v40  ;;  %v760_v18 = vmul.f32 0.001953125, %v732_v13  ;;  %v737_v63 = vpop.xlane.xlu1 %736 }
 0x292   :  { %v994_v57 = vadd.f32 %v2191_v15, %v909_v25  ;;  %v995_v56 = vadd.f32 %v2193_v58, %v910_v39  ;;  %v996_v11 = vadd.f32 %v2195_v20, %v911_v51  ;;  %v997_v30 = vadd.f32 %v2197_v1, %v912_v12 }
 0x293   :  { %v828_v54 = vmul.f32 %v1420_v0, %v2022_v61  ;;  %v829_v48 = vmul.f32 %v1420_v0, %v2025_v16  ;;  %v830_v44 = vmul.f32 %v1420_v0, %v2030_v49  ;;  %v831_v60 = vmul.f32 %v1420_v0, %v2033_v22 }
 0x294   :  { %v1351_v47 = vpack.c.bf16 %v995_v56, %v994_v57  ;;  %v1352_v8 = vpack.c.bf16 %v997_v30, %v996_v11  ;;  %1425 = vrsqrt.f32 %v775_v19  ;;  %v776_v31 = vadd.f32 1e-05, %v760_v18  ;;  %v2508_v11 = vld [vmem:[#allocation34_spill] sm:$0xff] }
 0x295   :  { %v913_v62 = vmul.f32 %v2183_v3, %v828_v54  ;;  %v914_v53 = vmul.f32 %v2185_v2, %v829_v48  ;;  %v915_v21 = vmul.f32 %v2187_v34, %v830_v44  ;;  %v916_v23 = vmul.f32 %v2189_v59, %v831_v60  ;;  %v2509_v54 = vld [vmem:[#allocation35_spill] sm:$0xff]  ;;  %v2510_v44 = vld [vmem:[#allocation36_spill] sm:$0xff] }
 0x296   :  { %v1422_v61 = vpop.eup %1421  ;;  %1236 = vst [vmem:[#allocation10 + $0x70] sm:$0xff] %v1351_v47  ;;  %1237 = vst [vmem:[#allocation10 + $0x78] sm:$0xff] %v1352_v8  ;;  %1427 = vrsqrt.f32 %v776_v31  ;;  %v761_v16 = vmul.f32 0.001953125, %v737_v63  ;;  %v2511_v63 = vld [vmem:[#allocation37_spill] sm:$0xff] }
 0x297   :  { %v742_v49 = vpop.xlane.xlu0 %741  ;;  %v998_v22 = vadd.f32 %v2191_v15, %v913_v62  ;;  %v999_v36 = vadd.f32 %v2193_v58, %v914_v53  ;;  %v1000_v37 = vadd.f32 %v2195_v20, %v915_v21  ;;  %v1001_v42 = vadd.f32 %v2197_v1, %v916_v23  ;;  %v2512_v62 = vld [vmem:[#allocation16_spill] sm:$0xff]  ;;  %v2513_v21 = vld [vmem:[#allocation17_spill] sm:$0xff] }
 0x298   :  { %v832_v41 = vmul.f32 %v1422_v61, %v2036_v17  ;;  %v833_v5 = vmul.f32 %v1422_v61, %v2039_v33  ;;  %v834_v35 = vmul.f32 %v1422_v61, %v2046_v32  ;;  %v835_v10 = vmul.f32 %v1422_v61, %v2055_v24  ;;  %v2507_v24 = vld [vmem:[#allocation33_spill] sm:$0xff] }
 0x299   :  { %v1424_v50 = vpop.eup %1423  ;;  %v1353_v55 = vpack.c.bf16 %v999_v36, %v998_v22  ;;  %v1354_v9 = vpack.c.bf16 %v1001_v42, %v1000_v37  ;;  %v777_v14 = vadd.f32 1e-05, %v761_v16  ;;  %v762_v45 = vmul.f32 0.001953125, %v742_v49  ;;  %v2514_v36 = vld [vmem:[#allocation15_spill] sm:$0xff]  ;;  %v2515_v42 = vld [vmem:[#allocation18_spill] sm:$0xff] }
 0x29a   :  { %v917_v46 = vmul.f32 %v2183_v3, %v832_v41  ;;  %v918_v29 = vmul.f32 %v2185_v2, %v833_v5  ;;  %v919_v28 = vmul.f32 %v2187_v34, %v834_v35  ;;  %v920_v6 = vmul.f32 %v2189_v59, %v835_v10  ;;  %v747_v10 = vpop.xlane.xlu1 %746 }
 0x29b   :  { %1238 = vst [vmem:[#allocation10 + $0x80] sm:$0xff] %v1353_v55  ;;  %1239 = vst [vmem:[#allocation10 + $0x88] sm:$0xff] %v1354_v9  ;;  %v836_v17 = vmul.f32 %v1424_v50, %v2062_v27  ;;  %v837_v33 = vmul.f32 %v1424_v50, %v2065_v4  ;;  %v838_v32 = vmul.f32 %v1424_v50, %v2070_v26  ;;  %1429 = vrsqrt.f32 %v777_v14 }
 0x29c   :  { %v839_v7 = vmul.f32 %v1424_v50, %v2507_v24  ;;  %v1002_v43 = vadd.f32 %v2191_v15, %v917_v46  ;;  %v1003_v13 = vadd.f32 %v2193_v58, %v918_v29  ;;  %v1004_v38 = vadd.f32 %v2195_v20, %v919_v28 }
 0x29d   :  { %v1005_v52 = vadd.f32 %v2197_v1, %v920_v6  ;;  %v921_v40 = vmul.f32 %v2183_v3, %v836_v17  ;;  %v922_v25 = vmul.f32 %v2185_v2, %v837_v33  ;;  %v923_v27 = vmul.f32 %v2187_v34, %v838_v32 }
 0x29e   :  { %v924_v4 = vmul.f32 %v2189_v59, %v839_v7  ;;  %v1426_v39 = vpop.eup %1425  ;;  %v1355_v26 = vpack.c.bf16 %v1003_v13, %v1002_v43  ;;  %v778_v12 = vadd.f32 1e-05, %v762_v45  ;;  %v763_v33 = vmul.f32 0.001953125, %v747_v10  ;;  %v2525_v10 = vld [vmem:[#allocation25_spill] sm:$0xff] }
 0x29f   :  { %v1356_v51 = vpack.c.bf16 %v1005_v52, %v1004_v38  ;;  %v1006_v0 = vadd.f32 %v2191_v15, %v921_v40  ;;  %v1007_v19 = vadd.f32 %v2193_v58, %v922_v25  ;;  %v1008_v18 = vadd.f32 %v2195_v20, %v923_v27  ;;  %v2516_v52 = vld [vmem:[#allocation20_spill] sm:$0xff]  ;;  %v2517_v25 = vld [vmem:[#allocation21_spill] sm:$0xff] }
 0x2a0   :  { %v1009_v57 = vadd.f32 %v2197_v1, %v924_v4  ;;  %v1428_v56 = vpop.eup %1427  ;;  %1240 = vst [vmem:[#allocation10 + $0x90] sm:$0xff] %v1355_v26  ;;  %v840_v30 = vmul.f32 %v1426_v39, %v2508_v11  ;;  %v841_v48 = vmul.f32 %v1426_v39, %v2509_v54  ;;  %v842_v60 = vmul.f32 %v1426_v39, %v2510_v44  ;;  %v2518_v4 = vld [vmem:[#allocation19_spill] sm:$0xff]  ;;  %v2519_v26 = vld [vmem:[#allocation22_spill] sm:$0xff] }
 0x2a1   :  { %1241 = vst [vmem:[#allocation10 + $0x98] sm:$0xff] %v1356_v51  ;;  %v843_v47 = vmul.f32 %v1426_v39, %v2511_v63  ;;  %v1357_v8 = vpack.c.bf16 %v1007_v19, %v1006_v0  ;;  %v844_v53 = vmul.f32 %v1428_v56, %v2512_v62  ;;  %v845_v23 = vmul.f32 %v1428_v56, %v2513_v21 }
 0x2a2   :  { %v1358_v31 = vpack.c.bf16 %v1009_v57, %v1008_v18  ;;  %v925_v61 = vmul.f32 %v2183_v3, %v840_v30  ;;  %v926_v16 = vmul.f32 %v2185_v2, %v841_v48  ;;  %v927_v49 = vmul.f32 %v2187_v34, %v842_v60  ;;  %v2520_v60 = vld [vmem:[#allocation23_spill] sm:$0xff] }
 0x2a3   :  { %v928_v22 = vmul.f32 %v2189_v59, %v843_v47  ;;  %1242 = vst [vmem:[#allocation10 + $0xa0] sm:$0xff] %v1357_v8  ;;  %v846_v37 = vmul.f32 %v1428_v56, %v2514_v36  ;;  %v847_v41 = vmul.f32 %v1428_v56, %v2515_v42  ;;  %v929_v5 = vmul.f32 %v2183_v3, %v844_v53  ;;  %v2521_v47 = vld [vmem:[#allocation24_spill] sm:$0xff]  ;;  %v2523_v53 = vld [vmem:[#allocation39_spill] sm:$0xff] }
 0x2a4   :  { %1243 = vst [vmem:[#allocation10 + $0xa8] sm:$0xff] %v1358_v31  ;;  %v930_v35 = vmul.f32 %v2185_v2, %v845_v23  ;;  %v1010_v50 = vadd.f32 %v2191_v15, %v925_v61  ;;  %v1011_v55 = vadd.f32 %v2193_v58, %v926_v16  ;;  %v1012_v9 = vadd.f32 %v2195_v20, %v927_v49  ;;  %v2522_v31 = vld [vmem:[#allocation38_spill] sm:$0xff] }
 0x2a5   :  { %v1013_v14 = vadd.f32 %v2197_v1, %v928_v22  ;;  %v931_v45 = vmul.f32 %v2187_v34, %v846_v37  ;;  %v932_v46 = vmul.f32 %v2189_v59, %v847_v41  ;;  %v1014_v29 = vadd.f32 %v2191_v15, %v929_v5  ;;  %v1430_v43 = vpop.eup %1429  ;;  %v2524_v5 = vld [vmem:[#allocation40_spill] sm:$0xff] }
 0x2a6   :  { %v1015_v28 = vadd.f32 %v2193_v58, %v930_v35  ;;  %v1359_v6 = vpack.c.bf16 %v1011_v55, %v1010_v50  ;;  %1431 = vrsqrt.f32 %v778_v12  ;;  %v779_v13 = vadd.f32 1e-05, %v763_v33  ;;  %v2526_v55 = vld [vmem:[#allocation41_spill] sm:$0xff] }
 0x2a7   :  { %v1360_v17 = vpack.c.bf16 %v1013_v14, %v1012_v9  ;;  %v1016_v32 = vadd.f32 %v2195_v20, %v931_v45  ;;  %v1017_v24 = vadd.f32 %v2197_v1, %v932_v46  ;;  %v848_v40 = vmul.f32 %v1430_v43, %v2516_v52  ;;  %v2527_v14 = vld [vmem:[#allocation42_spill] sm:$0xff] }
 0x2a8   :  { %v1361_v7 = vpack.c.bf16 %v1015_v28, %v1014_v29  ;;  %1244 = vst [vmem:[#allocation10 + $0xb0] sm:$0xff] %v1359_v6  ;;  %v849_v27 = vmul.f32 %v1430_v43, %v2517_v25  ;;  %v850_v39 = vmul.f32 %v1430_v43, %v2518_v4  ;;  %v851_v51 = vmul.f32 %v1430_v43, %v2519_v26 }
 0x2a9   :  { %1245 = vst [vmem:[#allocation10 + $0xb8] sm:$0xff] %v1360_v17  ;;  %v1362_v38 = vpack.c.bf16 %v1017_v24, %v1016_v32  ;;  %1433 = vrsqrt.f32 %v779_v13  ;;  %v933_v12 = vmul.f32 %v2183_v3, %v848_v40 }
 0x2aa   :  { %1246 = vst [vmem:[#allocation10 + $0xc0] sm:$0xff] %v1361_v7  ;;  %v934_v0 = vmul.f32 %v2185_v2, %v849_v27  ;;  %v935_v19 = vmul.f32 %v2187_v34, %v850_v39  ;;  %v936_v18 = vmul.f32 %v2189_v59, %v851_v51 }
 0x2ab   :  { %1247 = vst [vmem:[#allocation10 + $0xc8] sm:$0xff] %v1362_v38  ;;  %v1018_v57 = vadd.f32 %v2191_v15, %v933_v12 }
 0x2ac   :  { %v1019_v56 = vadd.f32 %v2193_v58, %v934_v0  ;;  %v1020_v11 = vadd.f32 %v2195_v20, %v935_v19  ;;  %v1021_v30 = vadd.f32 %v2197_v1, %v936_v18 }
 0x2ae   :  { %v1363_v54 = vpack.c.bf16 %v1019_v56, %v1018_v57  ;;  %v1364_v44 = vpack.c.bf16 %v1021_v30, %v1020_v11 }
 0x2b0   :  { %v1432_v48 = vpop.eup %1431  ;;  %1248 = vst [vmem:[#allocation10 + $0xd0] sm:$0xff] %v1363_v54  ;;  %1249 = vst [vmem:[#allocation10 + $0xd8] sm:$0xff] %v1364_v44 }
 0x2b1   :  { %v852_v63 = vmul.f32 %v1432_v48, %v2520_v60  ;;  %v853_v8 = vmul.f32 %v1432_v48, %v2521_v47  ;;  %v854_v62 = vmul.f32 %v1432_v48, %v2522_v31  ;;  %v855_v21 = vmul.f32 %v1432_v48, %v2523_v53 }
 0x2b3   :  { %v937_v23 = vmul.f32 %v2183_v3, %v852_v63  ;;  %v938_v61 = vmul.f32 %v2185_v2, %v853_v8  ;;  %v939_v16 = vmul.f32 %v2187_v34, %v854_v62  ;;  %v940_v49 = vmul.f32 %v2189_v59, %v855_v21  ;;  %v1434_v22 = vpop.eup %1433 }
 0x2b4   :  { %v856_v35 = vmul.f32 %v1434_v22, %v2524_v5  ;;  %v857_v50 = vmul.f32 %v1434_v22, %v2525_v10  ;;  %v858_v9 = vmul.f32 %v1434_v22, %v2526_v55  ;;  %v859_v45 = vmul.f32 %v1434_v22, %v2527_v14 }
 0x2b5   :  { %v1022_v36 = vadd.f32 %v2191_v15, %v937_v23  ;;  %v1023_v37 = vadd.f32 %v2193_v58, %v938_v61  ;;  %v1024_v42 = vadd.f32 %v2195_v20, %v939_v16  ;;  %v1025_v41 = vadd.f32 %v2197_v1, %v940_v49 }
 0x2b6   :  { %v941_v28 = vmul.f32 %v2183_v3, %v856_v35  ;;  %v942_v6 = vmul.f32 %v2185_v2, %v857_v50  ;;  %v943_v17 = vmul.f32 %v2187_v34, %v858_v9  ;;  %v944_v33 = vmul.f32 %v2189_v59, %v859_v45 }
 0x2b7   :  { %v1365_v46 = vpack.c.bf16 %v1023_v37, %v1022_v36  ;;  %v1366_v29 = vpack.c.bf16 %v1025_v41, %v1024_v42 }
 0x2b8   :  { %v1026_v32 = vadd.f32 %v2191_v15, %v941_v28  ;;  %v1027_v24 = vadd.f32 %v2193_v58, %v942_v6  ;;  %v1028_v7 = vadd.f32 %v2195_v20, %v943_v17  ;;  %v1029_v43 = vadd.f32 %v2197_v1, %v944_v33 }
 0x2b9   :  { %1250 = vst [vmem:[#allocation10 + $0xe0] sm:$0xff] %v1365_v46  ;;  %1251 = vst [vmem:[#allocation10 + $0xe8] sm:$0xff] %v1366_v29 }
 0x2ba   :  { %v1367_v13 = vpack.c.bf16 %v1027_v24, %v1026_v32  ;;  %v1368_v3 = vpack.c.bf16 %v1029_v43, %v1028_v7 }
 0x2bc   :  { %1252 = vst [vmem:[#allocation10 + $0xf0] sm:$0xff] %v1367_v13  ;;  %1253 = vst [vmem:[#allocation10 + $0xf8] sm:$0xff] %v1368_v3 }
 0x2bd   :  { %1534 = shalt.err (!%p1531_p8)
}
 0x2be   :  { %s1535_s17 = scalar_lea.hbm %s2410_s4, 4096 }
 0x2bf   :  { %p1536_p9 = scmp.ne.s32.totalorder %s2410_s4, %s1535_s17  ;;  %p1539_p10 = scmp.lt.u32.totalorder %s1535_s17, %s2410_s4 }
 0x2c1   :  { %p1541_p11 = pnand %p1539_p10, %p1536_p9 }
 0x2c3   :  { %1544 = shalt.err (!%p1541_p11)
}
 0x2c4   :  { %1265 = dma.vmem_to_hbm [thread:$0]  %s1260_s13, 4096, %s2410_s4, [#allocation4], %s1554_s25, %s1554_s25, %s1555_s26  }
 0x2c5   :  { %1551 = dma.done.wait [#allocation4], 4096  }
 0x2c6   :  { %1552 = vsyncadd [#allocation4], 4294963200 }
 0x2c7   :  { %1269 = vsyncpa [#allocation3], 1 }
 0x2c8   :  { %1270 = vsyncpa [#allocation6], 1 }
 0x2c9   :  { %1271 = vsyncpa [#allocation9], 1 }
 0x2ca   :  { %1272 = vsyncpa [#allocation4], 1 }

</bundles_post_ra>
